<compile_context>
chip_gen: v5e
topology: v5e:2x2
jax: 0.10.0
libtpu: 0.0.40
codegen_flags: <defaults>
</compile_context>

<pallas_src>
import jax
import jax.numpy as jnp
from jax import lax
from jax.experimental import pallas as pl
from jax.experimental.pallas import tpu as pltpu

NEG_SLOPE = 0.2        # DGL GATConv default negative_slope
MASK_VAL = -1e30       # finite "minus infinity" (keeps online-softmax math NaN-free)
LANE = 128


def _round_up(x, m):
    return (x + m - 1) // m * m


# ---------------------------------------------------------------------------
# Kernel 1: projection z = feat @ W, plus BOTH fused attention scores:
#   el_j = a_l . z_j   written lane-dense as a (1, td) row chunk
#   er_i = a_r . z_i   written as a (td, 1) column chunk
# ---------------------------------------------------------------------------
def _project_kernel(feat_ref, w_ref, al_ref, ar_ref, z_ref, el_ref, er_ref):
    # MXU matmul, bf16 inputs, f32 accumulation.
    z = jnp.dot(feat_ref[...], w_ref[...], preferred_element_type=jnp.float32)
    z_ref[...] = z.astype(z_ref.dtype)
    # Src score, lane-dense: (1, d) x (td, d) contracted on d -> (1, td) row.
    el_ref[...] = lax.dot_general(
        al_ref[...], z, dimension_numbers=(((1,), (1,)), ((), ())),
        preferred_element_type=jnp.float32)
    # Dst score as a (td, 1) column (read back as a (td, 1) block in kernel 2).
    er_ref[...] = jnp.sum(z * ar_ref[...], axis=-1, keepdims=True)


# ---------------------------------------------------------------------------
# Kernel 2: masked edge softmax (online / flash-style) + aggregation + bias + ReLU.
# grid = (dst_block, src_step); src axis is the reduction ("arbitrary") axis and
# walks a prefetched block-sparse schedule (only src blocks containing edges).
# ---------------------------------------------------------------------------
def _gat_attn_kernel(sched_ref, cnt_ref, zs_ref, er_ref, el_ref, adj_ref, b_ref,
                     out_ref, m_ref, l_ref):
    i = pl.program_id(0)
    j = pl.program_id(1)

    @pl.when(j == 0)
    def _init():
        m_ref[...] = jnp.full(m_ref.shape, MASK_VAL, m_ref.dtype)
        l_ref[...] = jnp.zeros_like(l_ref)
        out_ref[...] = jnp.zeros_like(out_ref)          # resident f32 accumulator

    @pl.when(j < cnt_ref[i])                             # skip empty / padded steps
    def _compute():
        er = er_ref[...]                                  # (td, 1) f32, precomputed
        el = el_ref[...]                                  # (1, ts) f32, lane-dense
        e = er + el                                       # (td, ts)
        e = jnp.where(e > 0, e, NEG_SLOPE * e)            # leaky_relu
        mask = adj_ref[...] != 0                          # int8 adjacency tile
        e = jnp.where(mask, e, MASK_VAL)

        m_prev = m_ref[...]
        m_new = jnp.maximum(m_prev, jnp.max(e, axis=-1, keepdims=True))
        corr = jnp.exp(m_prev - m_new)
        p = jnp.exp(e - m_new)
        p = jnp.where(mask, p, 0.0)                       # all-masked rows contribute 0

        l_ref[...] = corr * l_ref[...] + jnp.sum(p, axis=-1, keepdims=True)
        out_ref[...] = corr * out_ref[...] + jnp.dot(
            p.astype(jnp.bfloat16), zs_ref[...], preferred_element_type=jnp.float32)
        m_ref[...] = m_new

    @pl.when(j == pl.num_programs(1) - 1)
    def _finalize():
        # Clamp denom: zero in-degree rows give relu(bias) instead of NaN.
        inv = pl.reciprocal(jnp.maximum(l_ref[...], 1e-30), approx=True)
        out = out_ref[...] * inv + b_ref[...]
        out_ref[...] = jnp.maximum(out, 0.0).astype(out_ref.dtype)


# ---------------------------------------------------------------------------
# Layer wrapper: pad to TPU-friendly shapes, build the block-sparse src schedule,
# run the two kernels, slice back.
# ---------------------------------------------------------------------------
def gat_layer(feat, adj, w, attn_l, attn_r, bias, *, td=256, ts=512):
    N, F = feat.shape
    D = w.shape[1]

    # Tile sizing: both multiples of 128 (lane dim of adj / el tiles), td | ts | n_pad,
    # clamped so tiny graphs do not pad to 512.
    td = _round_up(max(1, min(td, _round_up(N, LANE))), LANE)
    ts = _round_up(max(td, min(ts, _round_up(N, td))), td)
    n_pad = _round_up(N, ts)
    f_pad = _round_up(F, LANE)
    d_pad = _round_up(D, LANE)
    n_blk_d = n_pad // td
    n_blk_s = n_pad // ts

    feat_p = jnp.pad(feat, ((0, n_pad - N), (0, f_pad - F))).astype(jnp.bfloat16)
    w_p = jnp.pad(w, ((0, f_pad - F), (0, d_pad - D))).astype(jnp.bfloat16)
    al_p = jnp.pad(attn_l, ((0, 0), (0, d_pad - D)))             # (1, d_pad) lane-dense
    ar_p = jnp.pad(attn_r, ((0, 0), (0, d_pad - D)))             # (1, d_pad) lane-dense
    b_p = jnp.pad(bias, ((0, 0), (0, d_pad - D)))                # (1, d_pad)
    adj_p = jnp.pad(adj, ((0, n_pad - N), (0, n_pad - N))).astype(jnp.int8)

    # 48 MiB: below v7x's 64 MiB/TC physical VMEM; plenty of headroom for the
    # (td, ts) f32 temporaries, which are the real VMEM consumers at large tiles.
    vmem_limit = 48 * 1024 * 1024

    # ---- kernel 1: projection + both attention scores ------------------------
    z_p, el_row, er_col = pl.pallas_call(
        _project_kernel,
        out_shape=(jax.ShapeDtypeStruct((n_pad, d_pad), jnp.bfloat16),
                   jax.ShapeDtypeStruct((1, n_pad), jnp.float32),    # el, lane-dense
                   jax.ShapeDtypeStruct((n_pad, 1), jnp.float32)),   # er, column
        grid=(n_pad // td,),
        in_specs=[
            pl.BlockSpec((td, f_pad), lambda i: (i, 0)),      # feat rows
            pl.BlockSpec((f_pad, d_pad), lambda i: (0, 0)),   # W (whole)
            pl.BlockSpec((1, d_pad), lambda i: (0, 0)),       # attn_l
            pl.BlockSpec((1, d_pad), lambda i: (0, 0)),       # attn_r
        ],
        out_specs=(pl.BlockSpec((td, d_pad), lambda i: (i, 0)),
                   pl.BlockSpec((1, td), lambda i: (0, i)),
                   pl.BlockSpec((td, 1), lambda i: (i, 0))),
        compiler_params=pltpu.CompilerParams(
            dimension_semantics=("parallel",), vmem_limit_bytes=vmem_limit),
    )(feat_p, w_p, al_p, ar_p)

    # ---- block-sparse src schedule (cheap XLA ops, O(n_blk^2)) --------------
    # For each dst block: compacted list of src blocks containing >= 1 edge, padded
    # with repeats of the last valid block (repeat => Pallas skips the DMA), plus
    # the number of valid blocks used to gate the kernel body.
    blk_any = (adj_p.reshape(n_blk_d, td, n_blk_s, ts) != 0).any(axis=(1, 3))
    counts = jnp.sum(blk_any, axis=1, dtype=jnp.int32)                       # (n_blk_d,)
    order = jnp.argsort(jnp.logical_not(blk_any).astype(jnp.int32),
                        axis=1).astype(jnp.int32)                            # valid first
    last_valid = order[jnp.arange(n_blk_d), jnp.maximum(counts - 1, 0)]
    pos = jnp.arange(n_blk_s, dtype=jnp.int32)[None, :]
    sched = jnp.where(pos < counts[:, None], order, last_valid[:, None])
    sched_flat = sched.reshape(-1).astype(jnp.int32)                         # (n_blk_d*n_blk_s,)

    # ---- kernel 2: online masked softmax + aggregation ----------------------
    grid_spec = pltpu.PrefetchScalarGridSpec(
        num_scalar_prefetch=2,
        grid=(n_blk_d, n_blk_s),
        in_specs=[
            pl.BlockSpec((ts, d_pad),
                         lambda i, j, sched, cnt: (sched[i * n_blk_s + j], 0)),   # z src rows
            pl.BlockSpec((td, 1), lambda i, j, sched, cnt: (i, 0)),               # er column
            pl.BlockSpec((1, ts),
                         lambda i, j, sched, cnt: (0, sched[i * n_blk_s + j])),   # el row chunk
            pl.BlockSpec((td, ts),
                         lambda i, j, sched, cnt: (i, sched[i * n_blk_s + j])),   # adjacency tile
            pl.BlockSpec((1, d_pad), lambda i, j, sched, cnt: (0, 0)),            # bias
        ],
        out_specs=pl.BlockSpec((td, d_pad), lambda i, j, sched, cnt: (i, 0)),
        scratch_shapes=[
            pltpu.VMEM((td, 1), jnp.float32),      # running max
            pltpu.VMEM((td, 1), jnp.float32),      # running denominator
        ],
    )
    out_p = pl.pallas_call(
        _gat_attn_kernel,
        out_shape=jax.ShapeDtypeStruct((n_pad, d_pad), jnp.float32),
        grid_spec=grid_spec,
        compiler_params=pltpu.CompilerParams(
            dimension_semantics=("parallel", "arbitrary"),
            vmem_limit_bytes=vmem_limit),
    )(sched_flat, counts, z_p, er_col, el_row, adj_p, b_p)

    return out_p[:N, :D]


# ---------------------------------------------------------------------------
# Parameter init (matches DGL GATConv.reset_parameters style) + module forward
# ---------------------------------------------------------------------------
def init_gatconv_params(key, in_feats, out_feats):
    kw, kl, kr = jax.random.split(key, 3)
    gain = jnp.sqrt(2.0)
    std_w = gain * jnp.sqrt(2.0 / (in_feats + out_feats))
    std_a = gain * jnp.sqrt(2.0 / (1 + out_feats))
    w = std_w * jax.random.normal(kw, (in_feats, out_feats), jnp.float32)
    attn_l = std_a * jax.random.normal(kl, (1, out_feats), jnp.float32)   # source
    attn_r = std_a * jax.random.normal(kr, (1, out_feats), jnp.float32)   # dest
    bias = jnp.zeros((1, out_feats), jnp.float32)
    return dict(w=w, attn_l=attn_l, attn_r=attn_r, bias=bias)


def init_prompted_gat_params(key, in_feats, h_feats, num_classes):
    k1, k2 = jax.random.split(key, 2)
    return {
        "conv1": init_gatconv_params(k1, in_feats, h_feats),
        "conv2": init_gatconv_params(k2, h_feats, h_feats),
        # Prompt parameters from __init__/reset_parameters (unused when prompt_len == 0).
        "sources1": jnp.ones((num_classes * 2, h_feats), jnp.float32),
        "targets1": jnp.ones((num_classes * 2, h_feats), jnp.float32),
        "adapt_weights1": jnp.full((num_classes * 2,), 0.01, jnp.float32),
        "sources2": jnp.ones((num_classes * 2, h_feats), jnp.float32),
        "targets2": jnp.ones((num_classes * 2, h_feats), jnp.float32),
        "adapt_weights2": jnp.concatenate(
            [jnp.full((num_classes,), 0.01, jnp.float32),
             jnp.full((num_classes,), -0.01, jnp.float32)]),
    }


def prompted_gat_forward(params, adj, feat):
    # prompt_len == 0 after reset_parameters() -> prompts1 = prompts2 = None.
    # TODO(synk): prompt-augmented path of PromptedGATConv not implemented (its source
    # is not provided and forward() with prompt_len == 0 never uses it).
    c1, c2 = params["conv1"], params["conv2"]
    h1 = gat_layer(feat, adj, c1["w"], c1["attn_l"], c1["attn_r"], c1["bias"])  # (N, h), ReLU fused
    h2 = gat_layer(h1, adj, c2["w"], c2["attn_l"], c2["attn_r"], c2["bias"])    # (N, h), ReLU fused
    return h1, h2


if __name__ == "__main__":
    N = 8          # number of graph nodes
    in_feats = 16
    h_feats = 32
    num_classes = 4

    key = jax.random.PRNGKey(0)
    k_feat, k_params = jax.random.split(key)

    feat = jax.random.normal(k_feat, (N, in_feats), jnp.float32)

    # Deterministic graph: ring (both directions) + self-loops, dense [dst, src] int8 mask.
    idx = jnp.arange(N)
    adj = jnp.zeros((N, N), jnp.int8)
    adj = adj.at[idx, idx].set(1)
    adj = adj.at[idx, (idx + 1) % N].set(1)
    adj = adj.at[idx, (idx - 1) % N].set(1)

    params = init_prompted_gat_params(k_params, in_feats, h_feats, num_classes)

    fwd = jax.jit(prompted_gat_forward)
    h1, h2 = fwd(params, adj, feat)
    jax.block_until_ready((h1, h2))

    assert h1.shape == (N, h_feats) and h2.shape == (N, h_feats)
    assert bool(jnp.all(jnp.isfinite(h1))) and bool(jnp.all(jnp.isfinite(h2)))
    print("KERNEL_OK")
</pallas_src>

<mosaic_0001>
module attributes {stable_mosaic.version = 11 : i64} {
  func.func @_gat_attn_kernel(%arg0: i32, %arg1: i32, %arg2: memref<1xi32, #tpu.memory_space<smem>>, %arg3: memref<1xi32, #tpu.memory_space<smem>>, %arg4: memref<128x128xbf16, #tpu.memory_space<vmem>>, %arg5: memref<128x1xf32, #tpu.memory_space<vmem>>, %arg6: memref<1x128xf32, #tpu.memory_space<vmem>>, %arg7: memref<128x128xi8, #tpu.memory_space<vmem>>, %arg8: memref<1x128xf32, #tpu.memory_space<vmem>>, %arg9: memref<128x128xf32, #tpu.memory_space<vmem>>, %arg10: memref<128x1xf32, #tpu.memory_space<vmem>>, %arg11: memref<128x1xf32, #tpu.memory_space<vmem>>) attributes {dimension_semantics = [#tpu.dimension_semantics<parallel>, #tpu.dimension_semantics<arbitrary>], iteration_bounds = array<i64: 1, 1>, scalar_prefetch = 2 : i64, scratch_operands = 2 : i64, tpu.core_type = #tpu.core_type<tc>, window_params = [{transform_indices = @transform_0, window_bounds = array<i64: 128, 128>}, {transform_indices = @transform_1, window_bounds = array<i64: 128, 1>}, {transform_indices = @transform_2, window_bounds = array<i64: 1, 128>}, {transform_indices = @transform_3, window_bounds = array<i64: 128, 128>}, {pipeline_mode = #tpu.pipeline_mode<synchronous>, transform_indices = @transform_4, window_bounds = array<i64: 1, 128>}, {transform_indices = @transform_5, window_bounds = array<i64: 128, 128>}]} {
    %c0_i32 = arith.constant 0 : i32
    %0 = arith.cmpi eq, %arg1, %c0_i32 : i32
    %1 = arith.extui %0 : i1 to i32
    %c0_i32_0 = arith.constant 0 : i32
    %2 = arith.cmpi ne, %1, %c0_i32_0 : i32
    scf.if %2 {
      %cst = arith.constant -1.000000e+30 : f32
      %11 = vector.broadcast %cst : f32 to vector<128x1xf32>
      %c0 = arith.constant 0 : index
      %c0_4 = arith.constant 0 : index
      %12 = vector.load %arg10[%c0, %c0_4] : memref<128x1xf32, #tpu.memory_space<vmem>>, vector<128x1xf32>
      tpu.vector_store %arg10[%c0, %c0_4], %11 {strides = array<i32>} : memref<128x1xf32, #tpu.memory_space<vmem>>, vector<128x1xf32>,
      %cst_5 = arith.constant 0.000000e+00 : f32
      %13 = vector.broadcast %cst_5 : f32 to vector<128x1xf32>
      %c0_6 = arith.constant 0 : index
      %c0_7 = arith.constant 0 : index
      %14 = vector.load %arg11[%c0_6, %c0_7] : memref<128x1xf32, #tpu.memory_space<vmem>>, vector<128x1xf32>
      tpu.vector_store %arg11[%c0_6, %c0_7], %13 {strides = array<i32>} : memref<128x1xf32, #tpu.memory_space<vmem>>, vector<128x1xf32>,
      %cst_8 = arith.constant 0.000000e+00 : f32
      %15 = vector.broadcast %cst_8 : f32 to vector<128x128xf32>
      %c0_9 = arith.constant 0 : index
      %c0_10 = arith.constant 0 : index
      %16 = vector.load %arg9[%c0_9, %c0_10] : memref<128x128xf32, #tpu.memory_space<vmem>>, vector<128x128xf32>
      tpu.vector_store %arg9[%c0_9, %c0_10], %15 {strides = array<i32>} : memref<128x128xf32, #tpu.memory_space<vmem>>, vector<128x128xf32>,
    } else {
    }
    %3 = arith.index_cast %arg0 : i32 to index
    %4 = memref.load %arg3[%3] : memref<1xi32, #tpu.memory_space<smem>>
    %5 = arith.cmpi slt, %arg1, %4 : i32
    %6 = arith.extui %5 : i1 to i32
    %c0_i32_1 = arith.constant 0 : i32
    %7 = arith.cmpi ne, %6, %c0_i32_1 : i32
    scf.if %7 {
      %c0 = arith.constant 0 : index
      %c0_4 = arith.constant 0 : index
      %11 = vector.load %arg5[%c0, %c0_4] : memref<128x1xf32, #tpu.memory_space<vmem>>, vector<128x1xf32>
      %c0_5 = arith.constant 0 : index
      %c0_6 = arith.constant 0 : index
      %12 = vector.load %arg6[%c0_5, %c0_6] : memref<1x128xf32, #tpu.memory_space<vmem>>, vector<1x128xf32>
      %13 = vector.broadcast %11 : vector<128x1xf32> to vector<128x128xf32>
      %14 = vector.broadcast %12 : vector<1x128xf32> to vector<128x128xf32>
      %15 = arith.addf %13, %14 : vector<128x128xf32>
      %cst = arith.constant 0.000000e+00 : f32
      %16 = vector.broadcast %cst : f32 to vector<128x128xf32>
      %17 = arith.cmpf ogt, %15, %16 : vector<128x128xf32>
      %cst_7 = arith.constant 2.000000e-01 : f32
      %18 = vector.broadcast %cst_7 : f32 to vector<128x128xf32>
      %19 = arith.mulf %18, %15 : vector<128x128xf32>
      %20 = arith.select %17, %15, %19 : vector<128x128xi1>, vector<128x128xf32>
      %c0_8 = arith.constant 0 : index
      %c0_9 = arith.constant 0 : index
      %21 = vector.load %arg7[%c0_8, %c0_9] : memref<128x128xi8, #tpu.memory_space<vmem>>, vector<128x128xi8>
      %c0_i8 = arith.constant 0 : i8
      %22 = vector.broadcast %c0_i8 : i8 to vector<128x128xi8>
      %23 = arith.cmpi ne, %21, %22 : vector<128x128xi8>
      %cst_10 = arith.constant -1.000000e+30 : f32
      %24 = vector.broadcast %cst_10 : f32 to vector<128x128xf32>
      %25 = arith.select %23, %20, %24 : vector<128x128xi1>, vector<128x128xf32>
      %c0_11 = arith.constant 0 : index
      %c0_12 = arith.constant 0 : index
      %26 = vector.load %arg10[%c0_11, %c0_12] : memref<128x1xf32, #tpu.memory_space<vmem>>, vector<128x1xf32>
      %cst_13 = arith.constant dense<0xFF800000> : vector<128xf32>
      %27 = vector.multi_reduction <maximumf>, %25, %cst_13 [1] : vector<128x128xf32> to vector<128xf32>
      %28 = vector.shape_cast %27 : vector<128xf32> to vector<128x1xf32>
      %29 = arith.maximumf %26, %28 : vector<128x1xf32>
      %30 = arith.subf %26, %29 : vector<128x1xf32>
      %31 = math.exp %30 : vector<128x1xf32>
      %32 = vector.broadcast %29 : vector<128x1xf32> to vector<128x128xf32>
      %33 = arith.subf %25, %32 : vector<128x128xf32>
      %34 = math.exp %33 : vector<128x128xf32>
      %cst_14 = arith.constant 0.000000e+00 : f32
      %35 = vector.broadcast %cst_14 : f32 to vector<128x128xf32>
      %36 = arith.select %23, %34, %35 : vector<128x128xi1>, vector<128x128xf32>
      %c0_15 = arith.constant 0 : index
      %c0_16 = arith.constant 0 : index
      %37 = vector.load %arg11[%c0_15, %c0_16] : memref<128x1xf32, #tpu.memory_space<vmem>>, vector<128x1xf32>
      %38 = arith.mulf %31, %37 : vector<128x1xf32>
      %cst_17 = arith.constant dense<0.000000e+00> : vector<128xf32>
      %39 = vector.multi_reduction <add>, %36, %cst_17 [1] : vector<128x128xf32> to vector<128xf32>
      %40 = vector.shape_cast %39 : vector<128xf32> to vector<128x1xf32>
      %41 = arith.addf %38, %40 : vector<128x1xf32>
      %c0_18 = arith.constant 0 : index
      %c0_19 = arith.constant 0 : index
      %42 = vector.load %arg11[%c0_18, %c0_19] : memref<128x1xf32, #tpu.memory_space<vmem>>, vector<128x1xf32>
      tpu.vector_store %arg11[%c0_18, %c0_19], %41 {strides = array<i32>} : memref<128x1xf32, #tpu.memory_space<vmem>>, vector<128x1xf32>,
      %c0_20 = arith.constant 0 : index
      %c0_21 = arith.constant 0 : index
      %43 = vector.load %arg9[%c0_20, %c0_21] : memref<128x128xf32, #tpu.memory_space<vmem>>, vector<128x128xf32>
      %44 = vector.broadcast %31 : vector<128x1xf32> to vector<128x128xf32>
      %45 = arith.mulf %44, %43 : vector<128x128xf32>
      %46 = arith.truncf %36 : vector<128x128xf32> to vector<128x128xbf16>
      %c0_22 = arith.constant 0 : index
      %c0_23 = arith.constant 0 : index
      %47 = vector.load %arg4[%c0_22, %c0_23] : memref<128x128xbf16, #tpu.memory_space<vmem>>, vector<128x128xbf16>
      %cst_24 = arith.constant dense<0.000000e+00> : vector<128x128xf32>
      %48 = tpu.matmul %46, %47, %cst_24 {dimension_numbers = #tpu.dot_dimension_numbers<[1], [0], [0], [1], [0, 0, 1, 1], [], []>} : vector<128x128xbf16>, vector<128x128xbf16>, vector<128x128xf32> -> vector<128x128xf32>
      %49 = arith.addf %45, %48 : vector<128x128xf32>
      %c0_25 = arith.constant 0 : index
      %c0_26 = arith.constant 0 : index
      %50 = vector.load %arg9[%c0_25, %c0_26] : memref<128x128xf32, #tpu.memory_space<vmem>>, vector<128x128xf32>
      tpu.vector_store %arg9[%c0_25, %c0_26], %49 {strides = array<i32>} : memref<128x128xf32, #tpu.memory_space<vmem>>, vector<128x128xf32>,
      %c0_27 = arith.constant 0 : index
      %c0_28 = arith.constant 0 : index
      %51 = vector.load %arg10[%c0_27, %c0_28] : memref<128x1xf32, #tpu.memory_space<vmem>>, vector<128x1xf32>
      tpu.vector_store %arg10[%c0_27, %c0_28], %29 {strides = array<i32>} : memref<128x1xf32, #tpu.memory_space<vmem>>, vector<128x1xf32>,
    } else {
    }
    %c0_i32_2 = arith.constant 0 : i32
    %8 = arith.cmpi eq, %arg1, %c0_i32_2 : i32
    %9 = arith.extui %8 : i1 to i32
    %c0_i32_3 = arith.constant 0 : i32
    %10 = arith.cmpi ne, %9, %c0_i32_3 : i32
    scf.if %10 {
      %c0 = arith.constant 0 : index
      %c0_4 = arith.constant 0 : index
      %11 = vector.load %arg11[%c0, %c0_4] : memref<128x1xf32, #tpu.memory_space<vmem>>, vector<128x1xf32>
      %cst = arith.constant 1.000000e-30 : f32
      %12 = vector.broadcast %cst : f32 to vector<128x1xf32>
      %13 = arith.maximumf %11, %12 : vector<128x1xf32>
      %14 = tpu.reciprocal %13 {approx = true} : vector<128x1xf32> -> vector<128x1xf32>
      %c0_5 = arith.constant 0 : index
      %c0_6 = arith.constant 0 : index
      %15 = vector.load %arg9[%c0_5, %c0_6] : memref<128x128xf32, #tpu.memory_space<vmem>>, vector<128x128xf32>
      %16 = vector.broadcast %14 : vector<128x1xf32> to vector<128x128xf32>
      %17 = arith.mulf %15, %16 : vector<128x128xf32>
      %c0_7 = arith.constant 0 : index
      %c0_8 = arith.constant 0 : index
      %18 = vector.load %arg8[%c0_7, %c0_8] : memref<1x128xf32, #tpu.memory_space<vmem>>, vector<1x128xf32>
      %19 = vector.broadcast %18 : vector<1x128xf32> to vector<128x128xf32>
      %20 = arith.addf %17, %19 : vector<128x128xf32>
      %cst_9 = arith.constant 0.000000e+00 : f32
      %21 = vector.broadcast %cst_9 : f32 to vector<128x128xf32>
      %22 = arith.maximumf %20, %21 : vector<128x128xf32>
      %c0_10 = arith.constant 0 : index
      %c0_11 = arith.constant 0 : index
      %23 = vector.load %arg9[%c0_10, %c0_11] : memref<128x128xf32, #tpu.memory_space<vmem>>, vector<128x128xf32>
      tpu.vector_store %arg9[%c0_10, %c0_11], %22 {strides = array<i32>} : memref<128x128xf32, #tpu.memory_space<vmem>>, vector<128x128xf32>,
    } else {
    }
    return
  }
  func.func @transform_0(%arg0: i32, %arg1: i32, %arg2: memref<1xi32, #tpu.memory_space<smem>>, %arg3: memref<1xi32, #tpu.memory_space<smem>>) -> (i32, i32) {
    %c1_i32 = arith.constant 1 : i32
    %0 = arith.muli %arg0, %c1_i32 : i32
    %1 = arith.addi %0, %arg1 : i32
    %2 = arith.index_cast %1 : i32 to index
    %3 = memref.load %arg2[%2] : memref<1xi32, #tpu.memory_space<smem>>
    %c0_i32 = arith.constant 0 : i32
    %c0_i32_0 = arith.constant 0 : i32
    return %3, %c0_i32 : i32, i32
  }
  func.func @transform_1(%arg0: i32, %arg1: i32, %arg2: memref<1xi32, #tpu.memory_space<smem>>, %arg3: memref<1xi32, #tpu.memory_space<smem>>) -> (i32, i32) {
    %c0_i32 = arith.constant 0 : i32
    %c0_i32_0 = arith.constant 0 : i32
    return %arg0, %c0_i32 : i32, i32
  }
  func.func @transform_2(%arg0: i32, %arg1: i32, %arg2: memref<1xi32, #tpu.memory_space<smem>>, %arg3: memref<1xi32, #tpu.memory_space<smem>>) -> (i32, i32) {
    %c1_i32 = arith.constant 1 : i32
    %0 = arith.muli %arg0, %c1_i32 : i32
    %1 = arith.addi %0, %arg1 : i32
    %2 = arith.index_cast %1 : i32 to index
    %3 = memref.load %arg2[%2] : memref<1xi32, #tpu.memory_space<smem>>
    %c0_i32 = arith.constant 0 : i32
    %c0_i32_0 = arith.constant 0 : i32
    return %c0_i32, %3 : i32, i32
  }
  func.func @transform_3(%arg0: i32, %arg1: i32, %arg2: memref<1xi32, #tpu.memory_space<smem>>, %arg3: memref<1xi32, #tpu.memory_space<smem>>) -> (i32, i32) {
    %c1_i32 = arith.constant 1 : i32
    %0 = arith.muli %arg0, %c1_i32 : i32
    %1 = arith.addi %0, %arg1 : i32
    %2 = arith.index_cast %1 : i32 to index
    %3 = memref.load %arg2[%2] : memref<1xi32, #tpu.memory_space<smem>>
    %c0_i32 = arith.constant 0 : i32
    return %arg0, %3 : i32, i32
  }
  func.func @transform_4(%arg0: i32, %arg1: i32, %arg2: memref<1xi32, #tpu.memory_space<smem>>, %arg3: memref<1xi32, #tpu.memory_space<smem>>) -> (i32, i32) {
    %c0_i32 = arith.constant 0 : i32
    %c0_i32_0 = arith.constant 0 : i32
    %c0_i32_1 = arith.constant 0 : i32
    return %c0_i32, %c0_i32_0 : i32, i32
  }
  func.func @transform_5(%arg0: i32, %arg1: i32, %arg2: memref<1xi32, #tpu.memory_space<smem>>, %arg3: memref<1xi32, #tpu.memory_space<smem>>) -> (i32, i32) {
    %c0_i32 = arith.constant 0 : i32
    %c0_i32_0 = arith.constant 0 : i32
    return %arg0, %c0_i32 : i32, i32
  }
}

module attributes {stable_mosaic.version = 11 : i64} {
  func.func @_project_kernel(%arg0: i32, %arg1: memref<128x128xbf16, #tpu.memory_space<vmem>>, %arg2: memref<128x128xbf16, #tpu.memory_space<vmem>>, %arg3: memref<1x128xf32, #tpu.memory_space<vmem>>, %arg4: memref<1x128xf32, #tpu.memory_space<vmem>>, %arg5: memref<128x128xbf16, #tpu.memory_space<vmem>>, %arg6: memref<1x128xf32, #tpu.memory_space<vmem>>, %arg7: memref<128x1xf32, #tpu.memory_space<vmem>>) attributes {dimension_semantics = [#tpu.dimension_semantics<parallel>], iteration_bounds = array<i64: 1>, scalar_prefetch = 0 : i64, scratch_operands = 0 : i64, tpu.core_type = #tpu.core_type<tc>, window_params = [{transform_indices = @transform_0, window_bounds = array<i64: 128, 128>}, {pipeline_mode = #tpu.pipeline_mode<synchronous>, transform_indices = @transform_1, window_bounds = array<i64: 128, 128>}, {pipeline_mode = #tpu.pipeline_mode<synchronous>, transform_indices = @transform_2, window_bounds = array<i64: 1, 128>}, {pipeline_mode = #tpu.pipeline_mode<synchronous>, transform_indices = @transform_3, window_bounds = array<i64: 1, 128>}, {transform_indices = @transform_4, window_bounds = array<i64: 128, 128>}, {transform_indices = @transform_5, window_bounds = array<i64: 1, 128>}, {transform_indices = @transform_6, window_bounds = array<i64: 128, 1>}]} {
    %c0 = arith.constant 0 : index
    %c0_0 = arith.constant 0 : index
    %0 = vector.load %arg1[%c0, %c0_0] : memref<128x128xbf16, #tpu.memory_space<vmem>>, vector<128x128xbf16>
    %c0_1 = arith.constant 0 : index
    %c0_2 = arith.constant 0 : index
    %1 = vector.load %arg2[%c0_1, %c0_2] : memref<128x128xbf16, #tpu.memory_space<vmem>>, vector<128x128xbf16>
    %cst = arith.constant dense<0.000000e+00> : vector<128x128xf32>
    %2 = tpu.matmul %0, %1, %cst {dimension_numbers = #tpu.dot_dimension_numbers<[1], [0], [0], [1], [0, 0, 1, 1], [], []>} : vector<128x128xbf16>, vector<128x128xbf16>, vector<128x128xf32> -> vector<128x128xf32>
    %3 = arith.truncf %2 : vector<128x128xf32> to vector<128x128xbf16>
    %c0_3 = arith.constant 0 : index
    %c0_4 = arith.constant 0 : index
    %4 = vector.load %arg5[%c0_3, %c0_4] : memref<128x128xbf16, #tpu.memory_space<vmem>>, vector<128x128xbf16>
    tpu.vector_store %arg5[%c0_3, %c0_4], %3 {strides = array<i32>} : memref<128x128xbf16, #tpu.memory_space<vmem>>, vector<128x128xbf16>,
    %c0_5 = arith.constant 0 : index
    %c0_6 = arith.constant 0 : index
    %5 = vector.load %arg3[%c0_5, %c0_6] : memref<1x128xf32, #tpu.memory_space<vmem>>, vector<1x128xf32>
    %cst_7 = arith.constant dense<0.000000e+00> : vector<1x128xf32>
    %6 = tpu.matmul %5, %2, %cst_7 {dimension_numbers = #tpu.dot_dimension_numbers<[1], [1], [0], [0], [0, 0, 1, 0], [], []>} : vector<1x128xf32>, vector<128x128xf32>, vector<1x128xf32> -> vector<1x128xf32>
    %c0_8 = arith.constant 0 : index
    %c0_9 = arith.constant 0 : index
    %7 = vector.load %arg6[%c0_8, %c0_9] : memref<1x128xf32, #tpu.memory_space<vmem>>, vector<1x128xf32>
    tpu.vector_store %arg6[%c0_8, %c0_9], %6 {strides = array<i32>} : memref<1x128xf32, #tpu.memory_space<vmem>>, vector<1x128xf32>,
    %c0_10 = arith.constant 0 : index
    %c0_11 = arith.constant 0 : index
    %8 = vector.load %arg4[%c0_10, %c0_11] : memref<1x128xf32, #tpu.memory_space<vmem>>, vector<1x128xf32>
    %9 = vector.broadcast %8 : vector<1x128xf32> to vector<128x128xf32>
    %10 = arith.mulf %2, %9 : vector<128x128xf32>
    %cst_12 = arith.constant dense<0.000000e+00> : vector<128xf32>
    %11 = vector.multi_reduction <add>, %10, %cst_12 [1] : vector<128x128xf32> to vector<128xf32>
    %12 = vector.shape_cast %11 : vector<128xf32> to vector<128x1xf32>
    %c0_13 = arith.constant 0 : index
    %c0_14 = arith.constant 0 : index
    %13 = vector.load %arg7[%c0_13, %c0_14] : memref<128x1xf32, #tpu.memory_space<vmem>>, vector<128x1xf32>
    tpu.vector_store %arg7[%c0_13, %c0_14], %12 {strides = array<i32>} : memref<128x1xf32, #tpu.memory_space<vmem>>, vector<128x1xf32>,
    return
  }
  func.func @transform_0(%arg0: i32) -> (i32, i32) {
    %c0_i32 = arith.constant 0 : i32
    %c0_i32_0 = arith.constant 0 : i32
    return %arg0, %c0_i32 : i32, i32
  }
  func.func @transform_1(%arg0: i32) -> (i32, i32) {
    %c0_i32 = arith.constant 0 : i32
    %c0_i32_0 = arith.constant 0 : i32
    %c0_i32_1 = arith.constant 0 : i32
    return %c0_i32, %c0_i32_0 : i32, i32
  }
  func.func @transform_2(%arg0: i32) -> (i32, i32) {
    %c0_i32 = arith.constant 0 : i32
    %c0_i32_0 = arith.constant 0 : i32
    %c0_i32_1 = arith.constant 0 : i32
    return %c0_i32, %c0_i32_0 : i32, i32
  }
  func.func @transform_3(%arg0: i32) -> (i32, i32) {
    %c0_i32 = arith.constant 0 : i32
    %c0_i32_0 = arith.constant 0 : i32
    %c0_i32_1 = arith.constant 0 : i32
    return %c0_i32, %c0_i32_0 : i32, i32
  }
  func.func @transform_4(%arg0: i32) -> (i32, i32) {
    %c0_i32 = arith.constant 0 : i32
    %c0_i32_0 = arith.constant 0 : i32
    return %arg0, %c0_i32 : i32, i32
  }
  func.func @transform_5(%arg0: i32) -> (i32, i32) {
    %c0_i32 = arith.constant 0 : i32
    %c0_i32_0 = arith.constant 0 : i32
    return %c0_i32, %arg0 : i32, i32
  }
  func.func @transform_6(%arg0: i32) -> (i32, i32) {
    %c0_i32 = arith.constant 0 : i32
    %c0_i32_0 = arith.constant 0 : i32
    return %arg0, %c0_i32 : i32, i32
  }
}

</mosaic_0001>

<bundles_post_ra>
// kernel: prompted_gat_forward.4
= control target key start
LH: loop header
LB: loop body
LE: loop exit
PB: predicated region body
PF: predicated region fallthrough
CT: control target
= control target key end

     0   :  { %vm303_vm0 = vcmask 7168   ;;  %s689_s1 = inlined_call_operand.vmem [shape: bf16[128,128], index: 1, kind: input, shape index: {}]   ;;  %s690_s0 = inlined_call_operand.vmem [shape: bf16[128,128], index: 0, kind: input, shape index: {}]   ;;  %s691_s3 = inlined_call_operand.vmem [shape: f32[1,128], index: 3, kind: input, shape index: {}]   ;;  %s692_s4 = inlined_call_operand.vmem [shape: bf16[128,128], index: 4, kind: output, shape index: {0}]   ;;  %s693_s2 = inlined_call_operand.vmem [shape: f32[1,128], index: 2, kind: input, shape index: {}]   ;;  %s694_s6 = inlined_call_operand.vmem [shape: f32[128,1], index: 6, kind: output, shape index: {2}]   ;;  %s695_s5 = inlined_call_operand.vmem [shape: f32[1,128], index: 5, kind: output, shape index: {1}]  }
   0x1   :  { %v411_v0 = vld [vmem:[%s689_s1 + $0x38] sm:$0xff]  ;;  %v410_v1 = vld [vmem:[%s689_s1 + $0x30] sm:$0xff]  ;;  %v409_v2 = vld [vmem:[%s689_s1 + $0x28] sm:$0xff] }
   0x2   :  { %148 = vmatpush.bf16.msra.mxu0 %v411_v0  ;;  %459 = vmatpush.bf16.msra.mxu2 %v411_v0  ;;  %v408_v3 = vld [vmem:[%s689_s1 + $0x20] sm:$0xff]  ;;  %v407_v4 = vld [vmem:[%s689_s1 + $0x18] sm:$0xff]  ;;  %v406_v5 = vld [vmem:[%s689_s1 + $0x10] sm:$0xff] }
   0x3   :  { %460 = vmatpush.bf16.msra.mxu3 %v411_v0  ;;  %v405_v6 = vld [vmem:[%s689_s1 + $0x8] sm:$0xff]  ;;  %v404_v7 = vld [vmem:[%s689_s1] sm:$0xff]  ;;  %v399_v9 = vld [vmem:[%s690_s0 + $0x18] sm:$0xff] }
   0x4   :  { %v396_v8 = vld [vmem:[%s690_s0] sm:$0xff]  ;;  %v402_v10 = vld [vmem:[%s690_s0 + $0x30] sm:$0xff]  ;;  %v397_v11 = vld [vmem:[%s690_s0 + $0x8] sm:$0xff] }
   0x5   :  { %v400_v12 = vld [vmem:[%s690_s0 + $0x20] sm:$0xff]  ;;  %v403_v13 = vld [vmem:[%s690_s0 + $0x38] sm:$0xff]  ;;  %v398_v14 = vld [vmem:[%s690_s0 + $0x10] sm:$0xff] }
   0x6   :  { %149 = vmatpush.bf16.msra.mxu0 %v410_v1  ;;  %461 = vmatpush.bf16.msra.mxu2 %v410_v1  ;;  %v401_v15 = vld [vmem:[%s690_s0 + $0x28] sm:$0xff]  ;;  %v562_v16 = vld [vmem:[%s691_s3] ss:$0 sm:$0xff] }
   0x7   :  { %462 = vmatpush.bf16.msra.mxu3 %v410_v1  ;;  %v229_v57 = vld [vmem:[%s693_s2] sm:$0x1] }
   0xa   :  { %150 = vmatpush.bf16.msra.mxu0 %v409_v2  ;;  %463 = vmatpush.bf16.msra.mxu2 %v409_v2 }
   0xb   :  { %464 = vmatpush.bf16.msra.mxu3 %v409_v2 }
   0xe   :  { %151 = vmatpush.bf16.msra.mxu0 %v408_v3  ;;  %465 = vmatpush.bf16.msra.mxu2 %v408_v3 }
   0xf   :  { %466 = vmatpush.bf16.msra.mxu3 %v408_v3 }
  0x12   :  { %152 = vmatpush.bf16.msra.mxu0 %v407_v4  ;;  %467 = vmatpush.bf16.msra.mxu2 %v407_v4 }
  0x13   :  { %468 = vmatpush.bf16.msra.mxu3 %v407_v4 }
  0x16   :  { %153 = vmatpush.bf16.msra.mxu0 %v406_v5  ;;  %469 = vmatpush.bf16.msra.mxu2 %v406_v5 }
  0x17   :  { %470 = vmatpush.bf16.msra.mxu3 %v406_v5 }
  0x1a   :  { %154 = vmatpush.bf16.msra.mxu0 %v405_v6  ;;  %471 = vmatpush.bf16.msra.mxu2 %v405_v6 }
  0x1b   :  { %472 = vmatpush.bf16.msra.mxu3 %v405_v6 }
  0x1e   :  { %155 = vmatpush.bf16.msra.mxu0 %v404_v7  ;;  %473 = vmatpush.bf16.msra.mxu2 %v404_v7 }
  0x1f   :  { %474 = vmatpush.bf16.msra.mxu3 %v404_v7 }
  0x21   :  { %156 = vmatmul.bf16.vlgmr.msra.gmra.mxu0 %v396_v8  ;;  %171 = vmatmul.bf16.vlgmr.msra.gmra.mxu2 %v399_v9 }
  0x22   :  { %186 = vmatmul.bf16.vlgmr.msra.gmra.mxu3 %v402_v10 }
  0x31   :  { %161 = vmatmul.bf16.gmra.mxu0 %v397_v11  ;;  %176 = vmatmul.bf16.gmra.mxu2 %v400_v12 }
  0x32   :  { %191 = vmatmul.bf16.gmra.mxu3 %v403_v13 }
  0x41   :  { %166 = vmatmul.bf16.gmra.mxu0 %v398_v14  ;;  %181 = vmatmul.bf16.gmra.mxu2 %v401_v15 }
  0x9e   :  { %v564_v17 = vpop.f32.mrf.mxu0 }
  0x9f   :  { %v255_v18 = vmul.f32 %v562_v16, %v564_v17 }
  0xa1   :  { %271 = vadd.xlane.f32.xlu0 %v255_v18 }
  0xa4   :  { %v568_v19 = vpop.f32.mrf.mxu2 }
  0xa5   :  { %v187_v20 = vpop.f32.mrf.mxu3  ;;  %v261_v23 = vmul.f32 %v562_v16, %v568_v19 }
  0xa6   :  { %v570_v21 = vpop.f32.mrf.mxu0  ;;  %v267_v30 = vmul.f32 %v562_v16, %v187_v20 }
  0xa7   :  { %v415_v22 = vpack.c.bf16 %v570_v21, %v564_v17  ;;  %v256_v35 = vmul.f32 %v562_v16, %v570_v21 }
  0xa9   :  { %416 = vst [vmem:[%s692_s4] sm:$0xff] %v415_v22   ;;  %283 = vadd.xlane.f32.xlu0 %v261_v23 }
  0xac   :  { %v174_v24 = vpop.f32.mrf.mxu2 }
  0xad   :  { %v430_v25 = vpack.c.bf16 %v174_v24, %v568_v19  ;;  %v189_v26 = vpop.f32.mrf.mxu3  ;;  %v262_v27 = vmul.f32 %v562_v16, %v174_v24 }
  0xae   :  { %v445_v28 = vpack.c.bf16 %v189_v26, %v187_v20  ;;  %v162_v29 = vpop.f32.mrf.mxu0  ;;  %v268_v54 = vmul.f32 %v562_v16, %v189_v26 }
  0xaf   :  { %454 = vst [vmem:[%s692_s4 + $0x18] sm:$0xff] %v430_v25   ;;  %285 = vadd.xlane.f32.xlu1 %v262_v27  ;;  %v257_v31 = vmul.f32 %v562_v16, %v162_v29 }
  0xb0   :  { %457 = vst [vmem:[%s692_s4 + $0x30] sm:$0xff] %v445_v28  }
  0xb1   :  { %295 = vadd.xlane.f32.xlu0 %v267_v30 }
  0xb4   :  { %v177_v32 = vpop.f32.mrf.mxu2 }
  0xb5   :  { %v192_v33 = vpop.f32.mrf.mxu3  ;;  %v263_v34 = vmul.f32 %v562_v16, %v177_v32 }
  0xb6   :  { %v164_v36 = vpop.f32.mrf.mxu0  ;;  %v269_v56 = vmul.f32 %v562_v16, %v192_v33 }
  0xb7   :  { %v420_v37 = vpack.c.bf16 %v164_v36, %v162_v29  ;;  %287 = vadd.xlane.f32.xlu2 %v263_v34  ;;  %275 = vadd.xlane.f32.xlu1 %v257_v31  ;;  %v258_v38 = vmul.f32 %v562_v16, %v164_v36 }
  0xb9   :  { %452 = vst [vmem:[%s692_s4 + $0x8] sm:$0xff] %v420_v37   ;;  %273 = vadd.xlane.f32.xlu0 %v256_v35 }
  0xbc   :  { %v179_v39 = vpop.f32.mrf.mxu2 }
  0xbd   :  { %v435_v40 = vpack.c.bf16 %v179_v39, %v177_v32  ;;  %v194_v41 = vpop.f32.mrf.mxu3  ;;  %v264_v44 = vmul.f32 %v562_v16, %v179_v39 }
  0xbe   :  { %v450_v42 = vpack.c.bf16 %v194_v41, %v192_v33  ;;  %230 = vmatpush.xpose.msra.mxu1 %v194_v41  ;;  %v167_v43 = vpop.f32.mrf.mxu0  ;;  %v270_v50 = vmul.f32 %v562_v16, %v194_v41 }
  0xbf   :  { %455 = vst [vmem:[%s692_s4 + $0x20] sm:$0xff] %v435_v40   ;;  %277 = vadd.xlane.f32.xlu1 %v258_v38  ;;  %v259_v45 = vmul.f32 %v562_v16, %v167_v43 }
  0xc0   :  { %458 = vst [vmem:[%s692_s4 + $0x38] sm:$0xff] %v450_v42  }
  0xc1   :  { %289 = vadd.xlane.f32.xlu0 %v264_v44  ;;  %279 = vadd.xlane.f32.xlu2 %v259_v45 }
  0xc2   :  { %231 = vmatpush.xpose.msra.mxu1 %v192_v33 }
  0xc4   :  { %v182_v46 = vpop.f32.mrf.mxu2 }
  0xc5   :  { %v265_v47 = vmul.f32 %v562_v16, %v182_v46 }
  0xc6   :  { %232 = vmatpush.xpose.msra.mxu1 %v189_v26  ;;  %v169_v48 = vpop.f32.mrf.mxu0 }
  0xc7   :  { %v425_v49 = vpack.c.bf16 %v169_v48, %v167_v43  ;;  %291 = vadd.xlane.f32.xlu1 %v265_v47  ;;  %v260_v51 = vmul.f32 %v562_v16, %v169_v48 }
  0xc9   :  { %453 = vst [vmem:[%s692_s4 + $0x10] sm:$0xff] %v425_v49   ;;  %301 = vadd.xlane.f32.xlu0 %v270_v50  ;;  %281 = vadd.xlane.f32.xlu2 %v260_v51 }
  0xca   :  { %233 = vmatpush.xpose.msra.mxu1 %v187_v20 }
  0xcc   :  { %v184_v52 = vpop.f32.mrf.mxu2 }
  0xcd   :  { %v440_v53 = vpack.c.bf16 %v184_v52, %v182_v46  ;;  %v266_v55 = vmul.f32 %v562_v16, %v184_v52 }
  0xce   :  { %234 = vmatpush.xpose.msra.mxu1 %v184_v52 }
  0xcf   :  { %456 = vst [vmem:[%s692_s4 + $0x28] sm:$0xff] %v440_v53   ;;  %297 = vadd.xlane.f32.xlu1 %v268_v54 }
  0xd1   :  { %293 = vadd.xlane.f32.xlu2 %v266_v55 }
  0xd2   :  { %235 = vmatpush.xpose.msra.mxu1 %v182_v46 }
  0xd6   :  { %236 = vmatpush.xpose.msra.mxu1 %v179_v39 }
  0xd9   :  { %299 = vadd.xlane.f32.xlu2 %v269_v56 }
  0xda   :  { %237 = vmatpush.xpose.msra.mxu1 %v177_v32 }
  0xde   :  { %238 = vmatpush.xpose.msra.mxu1 %v174_v24 }
  0xe2   :  { %239 = vmatpush.xpose.msra.mxu1 %v568_v19 }
  0xe6   :  { %240 = vmatpush.xpose.msra.mxu1 %v169_v48 }
  0xea   :  { %241 = vmatpush.xpose.msra.mxu1 %v167_v43 }
  0xee   :  { %242 = vmatpush.xpose.msra.mxu1 %v164_v36 }
  0xf2   :  { %243 = vmatpush.xpose.msra.mxu1 %v162_v29 }
  0xf6   :  { %244 = vmatpush.xpose.msra.mxu1 %v570_v21 }
  0xfa   :  { %245 = vmatpush.xpose.msra.mxu1 %v564_v17 }
  0xfd   :  { %246 = vmatmul.f32.vlgmr.msra.gmra.mxu1 %v229_v57 }
 0x114   :  { %v272_v58 = vpop.xlane.xlu0 %271 }
 0x115   :  { %304 = vst.msk [vmem:[%s694_s6] sm:$0xff] %vm303_vm0, %v272_v58 }
 0x11c   :  { %v284_v59 = vpop.xlane.xlu0 %283 }
 0x11d   :  { %310 = vst.msk [vmem:[%s694_s6 + $0x30] sm:$0xff] %vm303_vm0, %v284_v59 }
 0x122   :  { %v286_v60 = vpop.xlane.xlu1 %285 }
 0x123   :  { %311 = vst.msk [vmem:[%s694_s6 + $0x38] sm:$0xff] %vm303_vm0, %v286_v60 }
 0x124   :  { %v296_v61 = vpop.xlane.xlu0 %295 }
 0x125   :  { %316 = vst.msk [vmem:[%s694_s6 + $0x60] sm:$0xff] %vm303_vm0, %v296_v61 }
 0x12a   :  { %v288_v62 = vpop.xlane.xlu2 %287  ;;  %v276_v63 = vpop.xlane.xlu1 %275 }
 0x12b   :  { %312 = vst.msk [vmem:[%s694_s6 + $0x40] sm:$0xff] %vm303_vm0, %v288_v62 }
 0x12c   :  { %306 = vst.msk [vmem:[%s694_s6 + $0x10] sm:$0xff] %vm303_vm0, %v276_v63  ;;  %v274_v0 = vpop.xlane.xlu0 %273 }
 0x12d   :  { %305 = vst.msk [vmem:[%s694_s6 + $0x8] sm:$0xff] %vm303_vm0, %v274_v0 }
 0x132   :  { %v278_v1 = vpop.xlane.xlu1 %277 }
 0x133   :  { %307 = vst.msk [vmem:[%s694_s6 + $0x18] sm:$0xff] %vm303_vm0, %v278_v1 }
 0x134   :  { %v290_v2 = vpop.xlane.xlu0 %289  ;;  %v280_v3 = vpop.xlane.xlu2 %279 }
 0x135   :  { %313 = vst.msk [vmem:[%s694_s6 + $0x48] sm:$0xff] %vm303_vm0, %v290_v2 }
 0x136   :  { %308 = vst.msk [vmem:[%s694_s6 + $0x20] sm:$0xff] %vm303_vm0, %v280_v3 }
 0x13a   :  { %v292_v4 = vpop.xlane.xlu1 %291 }
 0x13b   :  { %314 = vst.msk [vmem:[%s694_s6 + $0x50] sm:$0xff] %vm303_vm0, %v292_v4 }
 0x13c   :  { %v302_v5 = vpop.xlane.xlu0 %301  ;;  %v282_v6 = vpop.xlane.xlu2 %281 }
 0x13d   :  { %319 = vst.msk [vmem:[%s694_s6 + $0x78] sm:$0xff] %vm303_vm0, %v302_v5 }
 0x13e   :  { %309 = vst.msk [vmem:[%s694_s6 + $0x28] sm:$0xff] %vm303_vm0, %v282_v6 }
 0x142   :  { %v298_v7 = vpop.xlane.xlu1 %297 }
 0x143   :  { %317 = vst.msk [vmem:[%s694_s6 + $0x68] sm:$0xff] %vm303_vm0, %v298_v7 }
 0x144   :  { %v294_v8 = vpop.xlane.xlu2 %293 }
 0x145   :  { %315 = vst.msk [vmem:[%s694_s6 + $0x58] sm:$0xff] %vm303_vm0, %v294_v8 }
 0x14c   :  { %v300_v9 = vpop.xlane.xlu2 %299 }
 0x14d   :  { %318 = vst.msk [vmem:[%s694_s6 + $0x70] sm:$0xff] %vm303_vm0, %v300_v9 }
 0x17a   :  { %v247_v10 = vpop.f32.mrf.mxu1 }
 0x17b   :  { %250 = vst [vmem:[%s695_s5] sm:$0x1] %v247_v10 }

// kernel: prompted_gat_forward.5
= control target key start
LH: loop header
LB: loop body
LE: loop exit
PB: predicated region body
PF: predicated region fallthrough
CT: control target
= control target key end

     0   :  { %vm2535_vm0 = vcmask 7168   ;;  %v1525_v0 = vmov -1e+30   ;;  %v1526_v1 = vmov 0.0   ;;  %s2527_s0 = inlined_call_operand.<no memory space> [shape: s32[1], index: 0, kind: input, shape index: {}]   ;;  %s2528_s1 = inlined_call_operand.<no memory space> [shape: s32[1], index: 1, kind: input, shape index: {}]   ;;  %s2529_s3 = inlined_call_operand.vmem [shape: f32[128,1], index: 3, kind: input, shape index: {}]   ;;  %s2530_s6 = inlined_call_operand.vmem [shape: f32[1,128], index: 6, kind: input, shape index: {}]   ;;  %s2531_s4 = inlined_call_operand.vmem [shape: f32[1,128], index: 4, kind: input, shape index: {}]   ;;  %s2532_s5 = inlined_call_operand.vmem [shape: s8[128,128], index: 5, kind: input, shape index: {}]   ;;  %s2533_s2 = inlined_call_operand.vmem [shape: bf16[128,128], index: 2, kind: input, shape index: {}]   ;;  %s2534_s7 = inlined_call_operand.vmem [shape: f32[128,128], index: 7, kind: output, shape index: {}]  }
   0x1   :  { %s1324_s26 = sshll.u32 %s2527_s0, 4  ;;  %p79_p0 = scmp.lt.s32.totalorder %s2527_s0, 0  ;;  %99 = vst.msk [vmem:[#allocation2] sm:$0xff] %vm2535_vm0, %v1525_v0 }
   0x2   :  { %p70_p1 = scmp.lt.s32.totalorder %s1324_s26, 15  ;;  %100 = vst.msk [vmem:[#allocation2 + $0x8] sm:$0xff] %vm2535_vm0, %v1525_v0  ;;  %p1328_p2 = scmp.le.s32.totalorder %s2528_s1, 0 }
   0x3   :  { %s2628_s0 = smov (!%p79_p0, %s2527_s0), 0  ;;  %101 = vst.msk [vmem:[#allocation2 + $0x10] sm:$0xff] %vm2535_vm0, %v1525_v0 }
   0x4   :  { %s2630_s26 = smov (!%p70_p1, %s1324_s26), 15  ;;  %102 = vst.msk [vmem:[#allocation2 + $0x18] sm:$0xff] %vm2535_vm0, %v1525_v0  ;;  %s81_s10 = scalar_lea.vmem %s2531_s4, %s2628_s0 }
   0x5   :  { %s1326_s11 = sshll.u32 %s2628_s0, 3  ;;  %103 = vst.msk [vmem:[#allocation2 + $0x20] sm:$0xff] %vm2535_vm0, %v1525_v0  ;;  %s1325_s12 = sshll.u32 %s2630_s26, 2 }
   0x6   :  { %s1593_s15 = scalar_lea.vmem %s2532_s5, %s1326_s11  ;;  %104 = vst.msk [vmem:[#allocation2 + $0x28] sm:$0xff] %vm2535_vm0, %v1525_v0  ;;  %s1599_s18 = scalar_lea.vmem %s2533_s2, %s1325_s12 }
   0x7   :  { %105 = vst.msk [vmem:[#allocation2 + $0x30] sm:$0xff] %vm2535_vm0, %v1525_v0 }
   0x8   :  { %106 = vst.msk [vmem:[#allocation2 + $0x38] sm:$0xff] %vm2535_vm0, %v1525_v0 }
   0x9   :  { %107 = vst.msk [vmem:[#allocation2 + $0x40] sm:$0xff] %vm2535_vm0, %v1525_v0 }
   0xa   :  { %108 = vst.msk [vmem:[#allocation2 + $0x48] sm:$0xff] %vm2535_vm0, %v1525_v0 }
   0xb   :  { %109 = vst.msk [vmem:[#allocation2 + $0x50] sm:$0xff] %vm2535_vm0, %v1525_v0 }
   0xc   :  { %110 = vst.msk [vmem:[#allocation2 + $0x58] sm:$0xff] %vm2535_vm0, %v1525_v0 }
   0xd   :  { %111 = vst.msk [vmem:[#allocation2 + $0x60] sm:$0xff] %vm2535_vm0, %v1525_v0 }
   0xe   :  { %112 = vst.msk [vmem:[#allocation2 + $0x68] sm:$0xff] %vm2535_vm0, %v1525_v0 }
   0xf   :  { %113 = vst.msk [vmem:[#allocation2 + $0x70] sm:$0xff] %vm2535_vm0, %v1525_v0 }
  0x10   :  { %114 = vst.msk [vmem:[#allocation2 + $0x78] sm:$0xff] %vm2535_vm0, %v1525_v0 }
  0x11   :  { %115 = vst.msk [vmem:[#allocation3] sm:$0xff] %vm2535_vm0, %v1526_v1 }
  0x12   :  { %116 = vst.msk [vmem:[#allocation3 + $0x8] sm:$0xff] %vm2535_vm0, %v1526_v1 }
  0x13   :  { %117 = vst.msk [vmem:[#allocation3 + $0x10] sm:$0xff] %vm2535_vm0, %v1526_v1 }
  0x14   :  { %118 = vst.msk [vmem:[#allocation3 + $0x18] sm:$0xff] %vm2535_vm0, %v1526_v1 }
  0x15   :  { %119 = vst.msk [vmem:[#allocation3 + $0x20] sm:$0xff] %vm2535_vm0, %v1526_v1 }
  0x16   :  { %120 = vst.msk [vmem:[#allocation3 + $0x28] sm:$0xff] %vm2535_vm0, %v1526_v1 }
  0x17   :  { %121 = vst.msk [vmem:[#allocation3 + $0x30] sm:$0xff] %vm2535_vm0, %v1526_v1 }
  0x18   :  { %122 = vst.msk [vmem:[#allocation3 + $0x38] sm:$0xff] %vm2535_vm0, %v1526_v1 }
  0x19   :  { %123 = vst.msk [vmem:[#allocation3 + $0x40] sm:$0xff] %vm2535_vm0, %v1526_v1 }
  0x1a   :  { %124 = vst.msk [vmem:[#allocation3 + $0x48] sm:$0xff] %vm2535_vm0, %v1526_v1 }
  0x1b   :  { %125 = vst.msk [vmem:[#allocation3 + $0x50] sm:$0xff] %vm2535_vm0, %v1526_v1 }
  0x1c   :  { %126 = vst.msk [vmem:[#allocation3 + $0x58] sm:$0xff] %vm2535_vm0, %v1526_v1 }
  0x1d   :  { %127 = vst.msk [vmem:[#allocation3 + $0x60] sm:$0xff] %vm2535_vm0, %v1526_v1 }
  0x1e   :  { %128 = vst.msk [vmem:[#allocation3 + $0x68] sm:$0xff] %vm2535_vm0, %v1526_v1 }
  0x1f   :  { %129 = vst.msk [vmem:[#allocation3 + $0x70] sm:$0xff] %vm2535_vm0, %v1526_v1 }
  0x20   :  { %130 = vst.msk [vmem:[#allocation3 + $0x78] sm:$0xff] %vm2535_vm0, %v1526_v1 }
  0x21   :  { %131 = vst [vmem:[%s2534_s7] sm:$0xff] %v1526_v1 }
  0x22   :  { %132 = vst [vmem:[%s2534_s7 + $0x8] sm:$0xff] %v1526_v1 }
  0x23   :  { %133 = vst [vmem:[%s2534_s7 + $0x10] sm:$0xff] %v1526_v1 }
  0x24   :  { %134 = vst [vmem:[%s2534_s7 + $0x18] sm:$0xff] %v1526_v1 }
  0x25   :  { %135 = vst [vmem:[%s2534_s7 + $0x20] sm:$0xff] %v1526_v1 }
  0x26   :  { %136 = vst [vmem:[%s2534_s7 + $0x28] sm:$0xff] %v1526_v1 }
  0x27   :  { %137 = vst [vmem:[%s2534_s7 + $0x30] sm:$0xff] %v1526_v1 }
  0x28   :  { %138 = vst [vmem:[%s2534_s7 + $0x38] sm:$0xff] %v1526_v1 }
  0x29   :  { %139 = vst [vmem:[%s2534_s7 + $0x40] sm:$0xff] %v1526_v1 }
  0x2a   :  { %140 = vst [vmem:[%s2534_s7 + $0x48] sm:$0xff] %v1526_v1 }
  0x2b   :  { %141 = vst [vmem:[%s2534_s7 + $0x50] sm:$0xff] %v1526_v1 }
  0x2c   :  { %142 = vst [vmem:[%s2534_s7 + $0x58] sm:$0xff] %v1526_v1  ;;  %151 = sbr.rel (%p1328_p2) target bundleno = 611 (0x263), region = 29 }
  0x2d   :  { %143 = vst [vmem:[%s2534_s7 + $0x60] sm:$0xff] %v1526_v1 }
  0x2e   :  { %144 = vst [vmem:[%s2534_s7 + $0x68] sm:$0xff] %v1526_v1 }
  0x2f   :  { %145 = vst [vmem:[%s2534_s7 + $0x70] sm:$0xff] %v1526_v1 }
  0x30   :  { %146 = vst [vmem:[%s2534_s7 + $0x78] sm:$0xff] %v1526_v1 }
  0x31   :  { %v154_v2 = vld [vmem:[%s2529_s3 + $0x10] sm:$0xff]  ;;  %v152_v3 = vld [vmem:[%s2529_s3] sm:$0xff]  ;;  %v1527_v4 = vmov 0   ;;  %v155_v6 = vld [vmem:[%s2529_s3 + $0x18] sm:$0xff] }
  0x32   :  { %1422 = vset.pattern.permute.xlu1 %v1527_v4  ;;  %1421 = vset.pattern.permute.xlu0 %v1527_v4  ;;  %v156_v5 = vld [vmem:[%s2529_s3 + $0x20] sm:$0xff]  ;;  %v153_v7 = vld [vmem:[%s2529_s3 + $0x8] sm:$0xff]  ;;  %v159_v9 = vld [vmem:[%s2529_s3 + $0x38] sm:$0xff] }
  0x33   :  { %181 = vperm.xlu1 %1422, %v154_v2   ;;  %171 = vperm.xlu0 %1421, %v152_v3   ;;  %v157_v8 = vld [vmem:[%s2529_s3 + $0x28] sm:$0xff]  ;;  %v158_v10 = vld [vmem:[%s2529_s3 + $0x30] sm:$0xff]  ;;  %v160_v11 = vld [vmem:[%s2529_s3 + $0x40] sm:$0xff] }
  0x34   :  { %1423 = vset.pattern.permute.xlu2 %v1527_v4  ;;  %v162_v12 = vld [vmem:[%s2529_s3 + $0x50] sm:$0xff]  ;;  %v161_v13 = vld [vmem:[%s2529_s3 + $0x48] sm:$0xff]  ;;  %v163_v14 = vld [vmem:[%s2529_s3 + $0x58] sm:$0xff] }
  0x35   :  { %191 = vperm.xlu2 %1423, %v156_v5   ;;  %v165_v15 = vld [vmem:[%s2529_s3 + $0x68] sm:$0xff]  ;;  %v164_v16 = vld [vmem:[%s2529_s3 + $0x60] sm:$0xff]  ;;  %v166_v17 = vld [vmem:[%s2529_s3 + $0x70] sm:$0xff] }
  0x36   :  { %v167_v18 = vld [vmem:[%s2529_s3 + $0x78] sm:$0xff]  ;;  %v316_v19 = vld [vmem:[%s1593_s15] sm:$0xff]  ;;  %v317_v21 = vld [vmem:[%s1593_s15 + $0x8] sm:$0xff] }
  0x37   :  { %vm320_vm1 = vnez %v316_v19  ;;  %vm321_vm2 = vnez %v317_v21  ;;  %v318_v41 = vld [vmem:[%s1593_s15 + $0x10] sm:$0xff]  ;;  %v1741_v45 = vld [vmem:[%s81_s10] ss:$0 sm:$0xff]  ;;  %v319_v5 = vld [vmem:[%s1593_s15 + $0x18] sm:$0xff] }
  0x38   :  { %v324_v20 = vsel %vm320_vm1, 16843009, %v1527_v4  ;;  %v325_v25 = vsel %vm321_vm2, 16843009, %v1527_v4  ;;  %vm322_vm6 = vnez %v318_v41  ;;  %vm323_vm15 = vnez %v319_v5 }
  0x39   :  { %v330_v22 = vunpack.c.2.s8 %v324_v20  ;;  %v328_v23 = vunpack.c.0.s8 %v324_v20  ;;  %v332_v27 = vunpack.c.0.s8 %v325_v25  ;;  %v329_v30 = vunpack.c.1.s8 %v324_v20 }
  0x3a   :  { %v331_v31 = vunpack.c.3.s8 %v324_v20  ;;  %v335_v39 = vunpack.c.3.s8 %v325_v25  ;;  %v334_v40 = vunpack.c.2.s8 %v325_v25  ;;  %v1754_v55 = vsel %vm322_vm6, 16843009, %v1527_v4 }
  0x3b   :  { %186 = vperm.xlu1 %1422, %v155_v6   ;;  %176 = vperm.xlu0 %1421, %v153_v7   ;;  %v348_v24 = vpack.c.b16 %v330_v22, %v330_v22  ;;  %v344_v26 = vpack.c.b16 %v328_v23, %v328_v23  ;;  %v352_v32 = vpack.c.b16 %v332_v27, %v332_v27  ;;  %v333_v56 = vunpack.c.1.s8 %v325_v25 }
  0x3c   :  { %v346_v33 = vpack.c.b16 %v329_v30, %v329_v30  ;;  %v350_v34 = vpack.c.b16 %v331_v31, %v331_v31  ;;  %v358_v46 = vpack.c.b16 %v335_v39, %v335_v39  ;;  %v356_v47 = vpack.c.b16 %v334_v40, %v334_v40 }
  0x3d   :  { %196 = vperm.xlu2 %1423, %v157_v8   ;;  %v349_v28 = vpack.c.b8 %v348_v24, %v348_v24  ;;  %v345_v29 = vpack.c.b8 %v344_v26, %v344_v26  ;;  %v353_v36 = vpack.c.b8 %v352_v32, %v352_v32  ;;  %v338_v60 = vunpack.c.2.s8 %v1754_v55 }
  0x3e   :  { %v347_v38 = vpack.c.b8 %v346_v33, %v346_v33  ;;  %v351_v43 = vpack.c.b8 %v350_v34, %v350_v34  ;;  %v359_v62 = vpack.c.b8 %v358_v46, %v358_v46  ;;  %v357_v0 = vpack.c.b8 %v356_v47, %v356_v47 }
  0x3f   :  { %vm378_vm3 = vnez %v349_v28  ;;  %vm376_vm4 = vnez %v345_v29  ;;  %vm380_vm5 = vnez %v353_v36  ;;  %v337_v3 = vunpack.c.1.s8 %v1754_v55 }
  0x40   :  { %v394_v35 = vsel %vm378_vm3, 16843009, %v1527_v4  ;;  %v392_v37 = vsel %vm376_vm4, 16843009, %v1527_v4  ;;  %vm377_vm7 = vnez %v347_v38  ;;  %v396_v50 = vsel %vm380_vm5, 16843009, %v1527_v4 }
  0x41   :  { %v410_v42 = vunpack.c.0.s8 %v394_v35  ;;  %v408_v44 = vunpack.c.0.s8 %v392_v37  ;;  %vm379_vm9 = vnez %v351_v43  ;;  %v393_v59 = vsel %vm377_vm7, 16843009, %v1527_v4 }
  0x42   :  { %v412_v61 = vunpack.c.0.s8 %v396_v50  ;;  %v395_v63 = vsel %vm379_vm9, 16843009, %v1527_v4  ;;  %v409_v7 = vunpack.c.0.s8 %v393_v59  ;;  %v354_v8 = vpack.c.b16 %v333_v56, %v333_v56 }
  0x43   :  { %206 = vperm.xlu1 %1422, %v159_v9   ;;  %201 = vperm.xlu0 %1421, %v158_v10   ;;  %vm1743_vm8 = vcmp.ne.s32.totalorder %v410_v42, 0  ;;  %vm1749_vm10 = vcmp.ne.s32.totalorder %v408_v44, 0  ;;  %vm383_vm14 = vnez %v359_v62  ;;  %vm382_vm2 = vnez %v357_v0 }
  0x44   :  { %vm1773_vm1 = vcmp.ne.s32.totalorder %v412_v61, 0  ;;  %vm1777_vm3 = vcmp.ne.s32.totalorder %v409_v7, 0  ;;  %v355_v21 = vpack.c.b8 %v354_v8, %v354_v8  ;;  %v336_v22 = vunpack.c.0.s8 %v1754_v55 }
  0x45   :  { %211 = vperm.xlu2 %1423, %v160_v11   ;;  %v364_v11 = vpack.c.b16 %v338_v60, %v338_v60  ;;  %v399_v24 = vsel %vm383_vm14, 16843009, %v1527_v4  ;;  %v1786_v26 = vsel %vm323_vm15, 16843009, %v1527_v4  ;;  %v398_v29 = vsel %vm382_vm2, 16843009, %v1527_v4 }
  0x46   :  { %v341_v30 = vunpack.c.1.s8 %v1786_v26  ;;  %v340_v31 = vunpack.c.0.s8 %v1786_v26  ;;  %v415_v35 = vunpack.c.0.s8 %v399_v24  ;;  %vm381_vm5 = vnez %v355_v21 }
  0x47   :  { %v365_v25 = vpack.c.b8 %v364_v11, %v364_v11  ;;  %v360_v36 = vpack.c.b16 %v336_v22, %v336_v22  ;;  %v339_v37 = vunpack.c.3.s8 %v1754_v55  ;;  %v414_v39 = vunpack.c.0.s8 %v398_v29 }
  0x48   :  { %v370_v43 = vpack.c.b16 %v341_v30, %v341_v30  ;;  %v368_v44 = vpack.c.b16 %v340_v31, %v340_v31  ;;  %v397_v47 = vsel %vm381_vm5, 16843009, %v1527_v4  ;;  %v2568_v30 = vmov 0 }
  0x49   :  { %vm1797_vm6 = vnez %v365_v25  ;;  %v366_v55 = vpack.c.b16 %v339_v37, %v339_v37  ;;  %v413_v5 = vunpack.c.0.s8 %v397_v47  ;;  %v342_v40 = vunpack.c.2.s8 %v1786_v26 }
  0x4a   :  { %v402_v59 = vsel %vm1797_vm6, 16843009, %v1527_v4  ;;  %v371_v62 = vpack.c.b8 %v370_v43, %v370_v43 }
  0x4b   :  { %221 = vperm.xlu1 %1422, %v162_v12   ;;  %216 = vperm.xlu0 %1421, %v161_v13   ;;  %v367_v24 = vpack.c.b8 %v366_v55, %v366_v55 }
  0x4c   :  { %vm389_vm5 = vnez %v371_v62 }
  0x4d   :  { %226 = vperm.xlu2 %1423, %v163_v14  }
  0x53   :  { %236 = vperm.xlu1 %1422, %v165_v15   ;;  %231 = vperm.xlu0 %1421, %v164_v16   ;;  %v411_v15 = vunpack.c.0.s8 %v395_v63  ;;  %v362_v16 = vpack.c.b16 %v337_v3, %v337_v3  ;;  %v369_v63 = vpack.c.b8 %v368_v44, %v368_v44 }
  0x55   :  { %241 = vperm.xlu2 %1423, %v166_v17   ;;  %v363_v34 = vpack.c.b8 %v362_v16, %v362_v16  ;;  %vm1807_vm9 = vcmp.ne.s32.totalorder %v411_v15, 0  ;;  %vm388_vm6 = vnez %v369_v63 }
  0x5b   :  { %246 = vperm.xlu0 %1421, %v167_v18  }
  0x8f   :  { %v192_v48 = vpop.permute.xlu2 %191 }
  0x90   :  { %v256_v51 = vadd.f32 %v1741_v45, %v192_v48 }
  0x92   :  { %v288_v6 = vmul.f32 0.2, %v256_v51  ;;  %vm272_vm13 = vcmp.gt.f32.partialorder %v256_v51, 0.0 }
  0x94   :  { %v304_v19 = vsel %vm272_vm13, %v256_v51, %v288_v6  ;;  %vm1819_vm13 = vcmp.ne.s32.totalorder %v414_v39, 0 }
  0x95   :  { %v1794_v33 = vsel %vm1773_vm1, %v304_v19, -1e+30 }
  0x97   :  { %v197_v27 = vpop.permute.xlu2 %196 }
  0x98   :  { %v257_v48 = vadd.f32 %v1741_v45, %v197_v27 }
  0x9a   :  { %vm273_vm2 = vcmp.gt.f32.partialorder %v257_v48, 0.0 }
  0x9f   :  { %v212_v3 = vpop.permute.xlu2 %211 }
  0xa0   :  { %v260_v25 = vadd.f32 %v1741_v45, %v212_v3 }
  0xa5   :  { %v182_v52 = vpop.permute.xlu1 %181  ;;  %v172_v53 = vpop.permute.xlu0 %171 }
  0xa6   :  { %v254_v57 = vadd.f32 %v1741_v45, %v182_v52  ;;  %v252_v58 = vadd.f32 %v1741_v45, %v172_v53  ;;  %v361_v53 = vpack.c.b8 %v360_v36, %v360_v36 }
  0xa8   :  { %v286_v1 = vmul.f32 0.2, %v254_v57  ;;  %v284_v2 = vmul.f32 0.2, %v252_v58  ;;  %vm270_vm11 = vcmp.gt.f32.partialorder %v254_v57, 0.0  ;;  %vm268_vm12 = vcmp.gt.f32.partialorder %v252_v58, 0.0 }
  0xaa   :  { %v302_v9 = vsel %vm270_vm11, %v254_v57, %v286_v1  ;;  %v300_v10 = vsel %vm268_vm12, %v252_v58, %v284_v2  ;;  %vm385_vm11 = vnez %v363_v34  ;;  %vm1813_vm12 = vcmp.ne.s32.totalorder %v415_v35, 0 }
  0xab   :  { %v1765_v12 = vsel %vm1743_vm8, %v302_v9, -1e+30  ;;  %v1769_v13 = vsel %vm1749_vm10, %v300_v10, -1e+30  ;;  %v401_v61 = vsel %vm385_vm11, 16843009, %v1527_v4  ;;  %v418_v9 = vunpack.c.0.s8 %v402_v59 }
  0xac   :  { %476 = vmax.xlane.f32.xlu0 %v1765_v12  ;;  %472 = vmax.xlane.f32.xlu1 %v1769_v13  ;;  %v289_v2 = vmul.f32 0.2, %v257_v48  ;;  %v343_v10 = vunpack.c.3.s8 %v1786_v26  ;;  %v404_v34 = vsel %vm388_vm6, 16843009, %v1527_v4  ;;  %v372_v59 = vpack.c.b16 %v342_v40, %v342_v40 }
  0xad   :  { %v187_v17 = vpop.permute.xlu1 %186  ;;  %v177_v18 = vpop.permute.xlu0 %176  ;;  %vm1858_vm11 = vcmp.ne.s32.totalorder %v418_v9, 0  ;;  %v420_v55 = vunpack.c.0.s8 %v404_v34 }
  0xae   :  { %v253_v23 = vadd.f32 %v1741_v45, %v177_v18  ;;  %v255_v28 = vadd.f32 %v1741_v45, %v187_v17  ;;  %v417_v17 = vunpack.c.0.s8 %v401_v61  ;;  %v305_v21 = vsel %vm273_vm2, %v257_v48, %v289_v2  ;;  %v227_v48 = vpop.permute.xlu2 %226 }
  0xaf   :  { %v374_v29 = vpack.c.b16 %v343_v10, %v343_v10  ;;  %v2569_v30 = vsel %vm1858_vm11, 4294967295, %v2568_v30  ;;  %v263_v63 = vadd.f32 %v1741_v45, %v227_v48  ;;  %vm1902_vm0 = vcmp.ne.s32.totalorder %v420_v55, 0  ;;  %v1954_v48 = vld [vmem:[#allocation2 + $0x10] sm:$0xff] }
  0xb0   :  { %v285_v32 = vmul.f32 0.2, %v253_v23  ;;  %vm269_vm4 = vcmp.gt.f32.partialorder %v253_v23, 0.0  ;;  %v287_v41 = vmul.f32 0.2, %v255_v28  ;;  %vm271_vm7 = vcmp.gt.f32.partialorder %v255_v28, 0.0 }
  0xb1   :  { %v375_v47 = vpack.c.b8 %v374_v29, %v374_v29  ;;  %v2578_v2 = vmov 0  ;;  %v373_v10 = vpack.c.b8 %v372_v59, %v372_v59  ;;  %v1970_v59 = vld [vmem:[#allocation2 + $0x8] sm:$0xff] }
  0xb2   :  { %v301_v38 = vsel %vm269_vm4, %v253_v23, %v285_v32  ;;  %v303_v60 = vsel %vm271_vm7, %v255_v28, %v287_v41  ;;  %vm1827_vm4 = vnez %v361_v53  ;;  %vm1848_vm7 = vcmp.ne.s32.totalorder %v413_v5, 0 }
  0xb3   :  { %v1803_v42 = vsel %vm1777_vm3, %v301_v38, -1e+30  ;;  %v1838_v15 = vsel %vm1807_vm9, %v303_v60, -1e+30  ;;  %v400_v23 = vsel %vm1827_vm4, 16843009, %v1527_v4  ;;  %vm1872_vm4 = vnez %v367_v24 }
  0xb4   :  { %480 = vmax.xlane.f32.xlu1 %v1794_v33  ;;  %474 = vmax.xlane.f32.xlu2 %v1803_v42  ;;  %v405_v32 = vsel %vm389_vm5, 16843009, %v1527_v4  ;;  %v1870_v37 = vsel %vm1848_vm7, %v305_v21, -1e+30  ;;  %v416_v38 = vunpack.c.0.s8 %v400_v23  ;;  %v292_v41 = vmul.f32 0.2, %v260_v25 }
  0xb5   :  { %v207_v50 = vpop.permute.xlu1 %206  ;;  %v202_v51 = vpop.permute.xlu0 %201  ;;  %v421_v53 = vunpack.c.0.s8 %v405_v32  ;;  %vm276_vm5 = vcmp.gt.f32.partialorder %v260_v25, 0.0  ;;  %v2579_v2 = vsel %vm1902_vm0, 4294967295, %v2578_v2 }
  0xb6   :  { %v259_v56 = vadd.f32 %v1741_v45, %v207_v50  ;;  %v258_v57 = vadd.f32 %v1741_v45, %v202_v51  ;;  %vm1893_vm6 = vcmp.ne.s32.totalorder %v416_v38, 0  ;;  %v242_v24 = vpop.permute.xlu2 %241 }
  0xb7   :  { %v266_v32 = vadd.f32 %v1741_v45, %v242_v24  ;;  %v2007_v24 = vld [vmem:[#allocation2 + $0x50] sm:$0xff] }
  0xb8   :  { %v291_v0 = vmul.f32 0.2, %v259_v56  ;;  %v290_v1 = vmul.f32 0.2, %v258_v57  ;;  %vm275_vm14 = vcmp.gt.f32.partialorder %v259_v56, 0.0  ;;  %vm274_vm15 = vcmp.gt.f32.partialorder %v258_v57, 0.0 }
  0xba   :  { %v307_v7 = vsel %vm275_vm14, %v259_v56, %v291_v0  ;;  %v306_v8 = vsel %vm274_vm15, %v258_v57, %v290_v1  ;;  %vm1862_vm14 = vcmp.ne.s32.totalorder %v417_v17, 0  ;;  %v403_v57 = vsel %vm1872_vm4, 16843009, %v1527_v4 }
  0xbb   :  { %v1834_v11 = vsel %vm1813_vm12, %v307_v7, -1e+30  ;;  %v1842_v16 = vsel %vm1819_vm13, %v306_v8, -1e+30  ;;  %v2576_v0 = vmov 0  ;;  %v308_v1 = vsel %vm276_vm5, %v260_v25, %v292_v41 }
  0xbc   :  { %486 = vmax.xlane.f32.xlu1 %v1834_v11  ;;  %478 = vmax.xlane.f32.xlu2 %v1838_v15  ;;  %v1909_v8 = vsel %vm1893_vm6, %v308_v1, -1e+30  ;;  %v295_v17 = vmul.f32 0.2, %v263_v63  ;;  %v419_v21 = vunpack.c.0.s8 %v403_v57  ;;  %vm279_vm5 = vcmp.gt.f32.partialorder %v263_v63, 0.0  ;;  %v1968_v57 = vld [vmem:[#allocation2 + $0x20] sm:$0xff] }
  0xbd   :  { %484 = vmax.xlane.f32.xlu0 %v1842_v16  ;;  %v222_v18 = vpop.permute.xlu1 %221  ;;  %v217_v19 = vpop.permute.xlu0 %216  ;;  %v298_v41 = vmul.f32 0.2, %v266_v32 }
  0xbe   :  { %v262_v27 = vadd.f32 %v1741_v45, %v222_v18  ;;  %v261_v28 = vadd.f32 %v1741_v45, %v217_v19 }
  0xc0   :  { %v294_v35 = vmul.f32 0.2, %v262_v27  ;;  %v293_v36 = vmul.f32 0.2, %v261_v28  ;;  %vm278_vm15 = vcmp.gt.f32.partialorder %v262_v27, 0.0  ;;  %vm277_vm2 = vcmp.gt.f32.partialorder %v261_v28, 0.0 }
  0xc2   :  { %v310_v43 = vsel %vm278_vm15, %v262_v27, %v294_v35  ;;  %v309_v44 = vsel %vm277_vm2, %v261_v28, %v293_v36  ;;  %vm391_vm15 = vnez %v375_v47  ;;  %vm1898_vm2 = vcmp.ne.s32.totalorder %v421_v53, 0  ;;  %v1952_v47 = vld [vmem:[#allocation2] sm:$0xff] }
  0xc3   :  { %v1879_v50 = vsel %vm1858_vm11, %v310_v43, -1e+30  ;;  %v1883_v51 = vsel %vm1862_vm14, %v309_v44, -1e+30  ;;  %v2577_v0 = vsel %vm1898_vm2, 4294967295, %v2576_v0  ;;  %v311_v28 = vsel %vm279_vm5, %v263_v63, %v295_v17 }
  0xc4   :  { %492 = vmax.xlane.f32.xlu1 %v1879_v50  ;;  %482 = vmax.xlane.f32.xlu2 %v1870_v37  ;;  %v407_v6 = vsel %vm391_vm15, 16843009, %v1527_v4  ;;  %vm1923_vm15 = vcmp.ne.s32.totalorder %v419_v21, 0  ;;  %v2582_v35 = vmov 0  ;;  %vm282_vm5 = vcmp.gt.f32.partialorder %v266_v32, 0.0 }
  0xc5   :  { %490 = vmax.xlane.f32.xlu0 %v1883_v51  ;;  %v237_v26 = vpop.permute.xlu1 %236  ;;  %v232_v56 = vpop.permute.xlu0 %231  ;;  %v423_v23 = vunpack.c.0.s8 %v407_v6  ;;  %v1935_v39 = vsel %vm1923_vm15, %v311_v28, -1e+30  ;;  %v314_v43 = vsel %vm282_vm5, %v266_v32, %v298_v41  ;;  %v2585_v44 = vmov 0  ;;  %v1988_v6 = vld [vmem:[#allocation2 + $0x30] sm:$0xff] }
  0xc6   :  { %v265_v60 = vadd.f32 %v1741_v45, %v237_v26  ;;  %v264_v61 = vadd.f32 %v1741_v45, %v232_v56 }
  0xc8   :  { %v297_v3 = vmul.f32 0.2, %v265_v60  ;;  %v296_v5 = vmul.f32 0.2, %v264_v61  ;;  %vm281_vm4 = vcmp.gt.f32.partialorder %v265_v60, 0.0  ;;  %vm280_vm11 = vcmp.gt.f32.partialorder %v264_v61, 0.0 }
  0xca   :  { %v313_v7 = vsel %vm281_vm4, %v265_v60, %v297_v3  ;;  %v312_v9 = vsel %vm280_vm11, %v264_v61, %v296_v5  ;;  %vm390_vm11 = vnez %v373_v10  ;;  %v1984_v3 = vld [vmem:[#allocation2 + $0x38] sm:$0xff] }
  0xcb   :  { %v1913_v18 = vsel %vm1898_vm2, %v313_v7, -1e+30  ;;  %v1917_v19 = vsel %vm1902_vm0, %v312_v9, -1e+30  ;;  %vm1928_vm2 = vcmp.ne.s32.totalorder %v423_v23, 0  ;;  %v1986_v5 = vld [vmem:[#allocation2 + $0x18] sm:$0xff] }
  0xcc   :  { %498 = vmax.xlane.f32.xlu1 %v1913_v18  ;;  %488 = vmax.xlane.f32.xlu2 %v1909_v8  ;;  %v2583_v35 = vsel %vm1928_vm2, 4294967295, %v2582_v35  ;;  %v406_v36 = vsel %vm390_vm11, 16843009, %v1527_v4  ;;  %vm2588_vm11 = vcmask 7168  }
  0xcd   :  { %496 = vmax.xlane.f32.xlu0 %v1917_v19  ;;  %v247_v25 = vpop.permute.xlu0 %246  ;;  %2584 = vst [vmem:[#allocation7_spill] sm:$0xff] %v2583_v35 }
  0xce   :  { %v267_v27 = vadd.f32 %v1741_v45, %v247_v25  ;;  %v422_v45 = vunpack.c.0.s8 %v406_v36  ;;  %v2009_v25 = vld [vmem:[#allocation2 + $0x28] sm:$0xff] }
  0xd0   :  { %v299_v34 = vmul.f32 0.2, %v267_v27  ;;  %vm283_vm4 = vcmp.gt.f32.partialorder %v267_v27, 0.0  ;;  %vm1943_vm0 = vcmp.ne.s32.totalorder %v422_v45, 0  ;;  %v2026_v45 = vld [vmem:[#allocation2 + $0x68] sm:$0xff] }
  0xd1   :  { %v2586_v44 = vsel %vm1943_vm0, 4294967295, %v2585_v44  ;;  %v1949_v4 = vsel %vm1943_vm0, %v314_v43, -1e+30  ;;  %2596 = vst [vmem:[#allocation9_spill] sm:$0xff] %v2026_v45  ;;  %v2028_v43 = vld [vmem:[#allocation2 + $0x40] sm:$0xff] }
  0xd2   :  { %v315_v38 = vsel %vm283_vm4, %v267_v27, %v299_v34  ;;  %2587 = vst [vmem:[#allocation8_spill] sm:$0xff] %v2586_v44  ;;  %vm2589_vm4 = vmmov %vm2588_vm11  ;;  %v2011_v27 = vld [vmem:[#allocation2 + $0x48] sm:$0xff] }
  0xd3   :  { %v1939_v40 = vsel %vm1928_vm2, %v315_v38, -1e+30  ;;  %vm2590_vm5 = vmmov %vm2589_vm4 }
  0xd4   :  { %494 = vmax.xlane.f32.xlu2 %v1935_v39 }
  0xd5   :  { %502 = vmax.xlane.f32.xlu0 %v1939_v40 }
  0xdc   :  { %500 = vmax.xlane.f32.xlu2 %v1949_v4 }
 0x11f   :  { %v473_v53 = vpop.xlane.xlu1 %472  ;;  %v477_v55 = vpop.xlane.xlu0 %476 }
 0x120   :  { %v1957_v26 = vmax.f32 %v1952_v47, %v473_v53  ;;  %v1960_v56 = vmax.f32 %v1954_v48, %v477_v55  ;;  %v2030_v53 = vld [vmem:[#allocation2 + $0x60] sm:$0xff] }
 0x122   :  { %1074 = vst.msk [vmem:[#allocation2] sm:$0xff] %vm2588_vm11, %v1957_v26  ;;  %570 = vperm.xlu1 %1422, %v1957_v26   ;;  %580 = vperm.xlu0 %1421, %v1960_v56   ;;  %vm2591_vm11 = vmmov %vm2589_vm4  ;;  %v520_v35 = vsub.f32 %v1952_v47, %v1957_v26  ;;  %v2079_v26 = vld [vmem:[#allocation2 + $0x70] sm:$0xff] }
 0x123   :  { %1076 = vst.msk [vmem:[#allocation2 + $0x10] sm:$0xff] %vm2589_vm4, %v1960_v56 }
 0x127   :  { %v481_v60 = vpop.xlane.xlu1 %480  ;;  %v475_v61 = vpop.xlane.xlu2 %474 }
 0x128   :  { %v1973_v63 = vmax.f32 %v1968_v57, %v481_v60  ;;  %v1976_v1 = vmax.f32 %v1970_v59, %v475_v61 }
 0x12a   :  { %1078 = vst.msk [vmem:[#allocation2 + $0x20] sm:$0xff] %vm2590_vm5, %v1973_v63  ;;  %575 = vperm.xlu2 %1423, %v1976_v1   ;;  %590 = vperm.xlu0 %1421, %v1973_v63   ;;  %vm2592_vm5 = vmmov %vm2589_vm4  ;;  %v524_v47 = vsub.f32 %v1968_v57, %v1973_v63 }
 0x12b   :  { %1075 = vst.msk [vmem:[#allocation2 + $0x8] sm:$0xff] %vm2591_vm11, %v1976_v1  ;;  %vm2593_vm11 = vmmov %vm2589_vm4 }
 0x12f   :  { %v487_v7 = vpop.xlane.xlu1 %486  ;;  %v479_v9 = vpop.xlane.xlu2 %478 }
 0x130   :  { %v1991_v10 = vmax.f32 %v1984_v3, %v487_v7  ;;  %v1994_v17 = vmax.f32 %v1986_v5, %v479_v9  ;;  %v485_v21 = vpop.xlane.xlu0 %484 }
 0x131   :  { %v1997_v23 = vmax.f32 %v1988_v6, %v485_v21 }
 0x132   :  { %1081 = vst.msk [vmem:[#allocation2 + $0x38] sm:$0xff] %vm2589_vm4, %v1991_v10  ;;  %585 = vperm.xlu1 %1422, %v1994_v17   ;;  %605 = vperm.xlu0 %1421, %v1991_v10   ;;  %v527_v57 = vsub.f32 %v1984_v3, %v1991_v10 }
 0x133   :  { %1077 = vst.msk [vmem:[#allocation2 + $0x18] sm:$0xff] %vm2592_vm5, %v1994_v17  ;;  %vm2594_vm5 = vmmov %vm2589_vm4 }
 0x134   :  { %1080 = vst.msk [vmem:[#allocation2 + $0x30] sm:$0xff] %vm2593_vm11, %v1997_v23  ;;  %vm2595_vm11 = vmmov %vm2589_vm4 }
 0x137   :  { %v493_v28 = vpop.xlane.xlu1 %492  ;;  %v483_v32 = vpop.xlane.xlu2 %482 }
 0x138   :  { %v2014_v34 = vmax.f32 %v2007_v24, %v493_v28  ;;  %v509_v36 = vmax.f32 %v2009_v25, %v483_v32  ;;  %v491_v38 = vpop.xlane.xlu0 %490  ;;  %v522_v32 = vsub.f32 %v1954_v48, %v1960_v56  ;;  %v521_v48 = vsub.f32 %v1970_v59, %v1976_v1 }
 0x139   :  { %v2018_v41 = vmax.f32 %v2011_v27, %v491_v38  ;;  %v2054_v38 = vld [vmem:[#allocation2 + $0x58] sm:$0xff]  ;;  %v523_v56 = vsub.f32 %v1986_v5, %v1994_v17 }
 0x13a   :  { %1084 = vst.msk [vmem:[#allocation2 + $0x50] sm:$0xff] %vm2589_vm4, %v2014_v34  ;;  %595 = vperm.xlu2 %1423, %v509_v36   ;;  %600 = vperm.xlu1 %1422, %v1997_v23   ;;  %v530_v10 = vsub.f32 %v2007_v24, %v2014_v34 }
 0x13b   :  { %1079 = vst.msk [vmem:[#allocation2 + $0x28] sm:$0xff] %vm2594_vm5, %v509_v36  ;;  %vm2598_vm5 = vmmov %vm2589_vm4  ;;  %v542_v63 = vmul.f32 1.442695, %v523_v56 }
 0x13c   :  { %1083 = vst.msk [vmem:[#allocation2 + $0x48] sm:$0xff] %vm2595_vm11, %v2018_v41  ;;  %vm2599_vm11 = vmmov %vm2589_vm4 }
 0x13f   :  { %v499_v55 = vpop.xlane.xlu1 %498  ;;  %v489_v60 = vpop.xlane.xlu2 %488 }
 0x140   :  { %v2033_v61 = vmax.f32 %v2026_v45, %v499_v55  ;;  %v2036_v7 = vmax.f32 %v2028_v43, %v489_v60  ;;  %v497_v9 = vpop.xlane.xlu0 %496  ;;  %v2056_v55 = vld [vmem:[#allocation2 + $0x78] sm:$0xff] }
 0x141   :  { %v2039_v21 = vmax.f32 %v2030_v53, %v497_v9  ;;  %v540_v9 = vmul.f32 1.442695, %v522_v32  ;;  %v538_v32 = vmul.f32 1.442695, %v521_v48  ;;  %v550_v48 = vmul.f32 1.442695, %v527_v57 }
 0x142   :  { %2597 = vst [vmem:[#allocation10_spill] sm:$0xff] %v2033_v61  ;;  %610 = vperm.xlu2 %1423, %v2036_v7   ;;  %615 = vperm.xlu1 %1422, %v2018_v41   ;;  %v528_v3 = vsub.f32 %v2028_v43, %v2036_v7 }
 0x143   :  { %1087 = vst.msk [vmem:[#allocation2 + $0x68] sm:$0xff] %vm2589_vm4, %v2033_v61  ;;  %630 = vperm.xlu0 %1421, %v2039_v21   ;;  %1425 = vpow2.f32 %v540_v9 }
 0x144   :  { %1082 = vst.msk [vmem:[#allocation2 + $0x40] sm:$0xff] %vm2598_vm5, %v2036_v7  ;;  %vm2600_vm5 = vmmov %vm2589_vm4  ;;  %v529_v7 = vsub.f32 %v2011_v27, %v2018_v41  ;;  %v1390_v27 = vld [vmem:[%s1599_s18 + $0x28] sm:$0xff] }
 0x145   :  { %1086 = vst.msk [vmem:[#allocation2 + $0x60] sm:$0xff] %vm2599_vm11, %v2039_v21  ;;  %vm2601_vm11 = vmmov %vm2589_vm4 }
 0x147   :  { %v495_v60 = vpop.xlane.xlu2 %494 }
 0x148   :  { %v2059_v28 = vmax.f32 %v2054_v38, %v495_v60  ;;  %v503_v45 = vpop.xlane.xlu0 %502 }
 0x149   :  { %v2062_v44 = vmax.f32 %v2056_v55, %v503_v45  ;;  %v536_v45 = vmul.f32 1.442695, %v520_v35  ;;  %v2084_v1 = vpop.eup %1425  ;;  %v525_v35 = vsub.f32 %v2009_v25, %v509_v36  ;;  %v1392_v25 = vld [vmem:[%s1599_s18 + $0x38] sm:$0xff] }
 0x14a   :  { %1085 = vst.msk [vmem:[#allocation2 + $0x58] sm:$0xff] %vm2589_vm4, %v2059_v28  ;;  %635 = vperm.xlu2 %1423, %v2033_v61   ;;  %620 = vperm.xlu1 %1422, %v2014_v34   ;;  %v544_v61 = vmul.f32 1.442695, %v524_v47  ;;  %v531_v24 = vsub.f32 %v2054_v38, %v2059_v28  ;;  %v554_v34 = vmul.f32 1.442695, %v529_v7  ;;  %v1389_v38 = vld [vmem:[%s1599_s18 + $0x20] sm:$0xff]  ;;  %vm1361_vm4 = vmpackc.low %vm1777_vm3, %vm1749_vm10 }
 0x14b   :  { %1089 = vst.msk [vmem:[#allocation2 + $0x78] sm:$0xff] %vm2600_vm5, %v2062_v44  ;;  %625 = vperm.xlu0 %1421, %v2059_v28   ;;  %1427 = vpow2.f32 %v536_v45  ;;  %v546_v5 = vmul.f32 1.442695, %v525_v35  ;;  %993 = vmatpush.bf16.msra.mxu0 %v1392_v25  ;;  %v1391_v35 = vld [vmem:[%s1599_s18 + $0x30] sm:$0xff]  ;;  %v532_v28 = vsub.f32 %v2030_v53, %v2039_v21  ;;  %v2608_v29 = vld [vmem:[#allocation10_spill] sm:$0xff] }
 0x14c   :  { %1429 = vpow2.f32 %v538_v32  ;;  %v526_v32 = vsub.f32 %v1988_v6, %v1997_v23  ;;  %1393 = vmatpush.bf16.msra.mxu1 %v1392_v25  ;;  %1394 = vmatpush.bf16.msra.mxu2 %v1392_v25  ;;  %v552_v23 = vmul.f32 1.442695, %v528_v3  ;;  %v1387_v53 = vld [vmem:[%s1599_s18 + $0x10] sm:$0xff]  ;;  %v1386_v3 = vld [vmem:[%s1599_s18 + $0x8] sm:$0xff] }
 0x14d   :  { %1431 = vpow2.f32 %v544_v61  ;;  %1395 = vmatpush.bf16.msra.mxu3 %v1392_v25  ;;  %v556_v61 = vmul.f32 1.442695, %v530_v10  ;;  %v1388_v25 = vld [vmem:[%s1599_s18 + $0x18] sm:$0xff]  ;;  %v1385_v10 = vld [vmem:[%s1599_s18] sm:$0xff] }
 0x14e   :  { %1433 = vpow2.f32 %v542_v63  ;;  %v548_v6 = vmul.f32 1.442695, %v526_v32 }
 0x14f   :  { %v501_v60 = vpop.xlane.xlu2 %500  ;;  %1435 = vpow2.f32 %v546_v5  ;;  %994 = vmatpush.bf16.msra.mxu0 %v1391_v35  ;;  %v560_v5 = vmul.f32 1.442695, %v532_v28 }
 0x150   :  { %v2082_v59 = vmax.f32 %v2079_v26, %v501_v60  ;;  %1437 = vpow2.f32 %v550_v48  ;;  %v558_v60 = vmul.f32 1.442695, %v531_v24  ;;  %1396 = vmatpush.bf16.msra.mxu1 %v1391_v35  ;;  %1397 = vmatpush.bf16.msra.mxu2 %v1391_v35 }
 0x151   :  { %v2098_v17 = vpop.eup %1427  ;;  %1439 = vpow2.f32 %v548_v6  ;;  %1398 = vmatpush.bf16.msra.mxu3 %v1391_v35 }
 0x152   :  { %v534_v9 = vsub.f32 %v2079_v26, %v2082_v59  ;;  %1088 = vst.msk [vmem:[#allocation2 + $0x70] sm:$0xff] %vm2601_vm11, %v2082_v59  ;;  %640 = vperm.xlu2 %1423, %v2082_v59   ;;  %645 = vperm.xlu1 %1422, %v2062_v44   ;;  %v2100_v47 = vpop.eup %1429  ;;  %1441 = vpow2.f32 %v552_v23 }
 0x153   :  { %837 = vperm.xlu0 %1421, %v2084_v1   ;;  %v2102_v45 = vpop.eup %1431  ;;  %1443 = vpow2.f32 %v556_v61  ;;  %995 = vmatpush.bf16.msra.mxu0 %v1390_v27 }
 0x154   :  { %v2114_v36 = vpop.eup %1433  ;;  %1445 = vpow2.f32 %v554_v34  ;;  %1399 = vmatpush.bf16.msra.mxu1 %v1390_v27  ;;  %1400 = vmatpush.bf16.msra.mxu2 %v1390_v27 }
 0x155   :  { %v2116_v56 = vpop.eup %1435  ;;  %1447 = vpow2.f32 %v558_v60  ;;  %1401 = vmatpush.bf16.msra.mxu3 %v1390_v27 }
 0x156   :  { %v2118_v43 = vpop.eup %1437  ;;  %1449 = vpow2.f32 %v560_v5 }
 0x157   :  { %v2128_v57 = vpop.eup %1439  ;;  %996 = vmatpush.bf16.msra.mxu0 %v1389_v38 }
 0x158   :  { %v2130_v63 = vpop.eup %1441  ;;  %1402 = vmatpush.bf16.msra.mxu1 %v1389_v38  ;;  %1403 = vmatpush.bf16.msra.mxu2 %v1389_v38 }
 0x159   :  { %v2133_v41 = vpop.eup %1443  ;;  %1404 = vmatpush.bf16.msra.mxu3 %v1389_v38 }
 0x15a   :  { %827 = vperm.xlu2 %1423, %v2098_v17   ;;  %832 = vperm.xlu1 %1422, %v2100_v47   ;;  %v2141_v48 = vpop.eup %1445 }
 0x15b   :  { %847 = vperm.xlu0 %1421, %v2102_v45   ;;  %v2143_v32 = vpop.eup %1447  ;;  %997 = vmatpush.bf16.msra.mxu0 %v1388_v25 }
 0x15c   :  { %1405 = vmatpush.bf16.msra.mxu1 %v1388_v25  ;;  %1406 = vmatpush.bf16.msra.mxu2 %v1388_v25  ;;  %v2149_v21 = vpop.eup %1449 }
 0x15d   :  { %1407 = vmatpush.bf16.msra.mxu3 %v1388_v25 }
 0x15f   :  { %998 = vmatpush.bf16.msra.mxu0 %v1387_v53 }
 0x160   :  { %1408 = vmatpush.bf16.msra.mxu1 %v1387_v53  ;;  %1409 = vmatpush.bf16.msra.mxu2 %v1387_v53 }
 0x161   :  { %1410 = vmatpush.bf16.msra.mxu3 %v1387_v53 }
 0x162   :  { %842 = vperm.xlu2 %1423, %v2114_v36   ;;  %852 = vperm.xlu1 %1422, %v2116_v56  }
 0x163   :  { %862 = vperm.xlu0 %1421, %v2118_v43   ;;  %999 = vmatpush.bf16.msra.mxu0 %v1386_v3 }
 0x164   :  { %1411 = vmatpush.bf16.msra.mxu1 %v1386_v3  ;;  %1412 = vmatpush.bf16.msra.mxu2 %v1386_v3 }
 0x165   :  { %1413 = vmatpush.bf16.msra.mxu3 %v1386_v3 }
 0x167   :  { %1000 = vmatpush.bf16.msra.mxu0 %v1385_v10 }
 0x168   :  { %1414 = vmatpush.bf16.msra.mxu1 %v1385_v10  ;;  %1415 = vmatpush.bf16.msra.mxu2 %v1385_v10 }
 0x169   :  { %1416 = vmatpush.bf16.msra.mxu3 %v1385_v10 }
 0x16a   :  { %857 = vperm.xlu2 %1423, %v2128_v57   ;;  %867 = vperm.xlu1 %1422, %v2130_v63  }
 0x16b   :  { %877 = vperm.xlu0 %1421, %v2133_v41  }
 0x172   :  { %872 = vperm.xlu2 %1423, %v2141_v48   ;;  %882 = vperm.xlu1 %1422, %v2143_v32  }
 0x17a   :  { %887 = vperm.xlu2 %1423, %v2149_v21  }
 0x184   :  { %v576_v6 = vpop.permute.xlu2 %575 }
 0x185   :  { %v649_v23 = vsub.f32 %v1803_v42, %v576_v6 }
 0x187   :  { %v666_v61 = vmul.f32 1.442695, %v649_v23 }
 0x189   :  { %1451 = vpow2.f32 %v666_v61 }
 0x18f   :  { %v1452_v3 = vpop.eup %1451 }
 0x190   :  { %v697_v61 = vsel %vm1777_vm3, %v1452_v3, 0.0  ;;  %vm1364_vm3 = vmpackc.low %vm1807_vm9, %vm1743_vm8 }
 0x194   :  { %v571_v7 = vpop.permute.xlu1 %570  ;;  %v596_v24 = vpop.permute.xlu2 %595 }
 0x195   :  { %v648_v34 = vsub.f32 %v1769_v13, %v571_v7  ;;  %v581_v60 = vpop.permute.xlu0 %580  ;;  %v653_v38 = vsub.f32 %v1870_v37, %v596_v24 }
 0x196   :  { %v650_v35 = vsub.f32 %v1765_v12, %v581_v60 }
 0x197   :  { %v664_v27 = vmul.f32 1.442695, %v648_v34  ;;  %v674_v5 = vmul.f32 1.442695, %v653_v38 }
 0x198   :  { %v668_v28 = vmul.f32 1.442695, %v650_v35 }
 0x199   :  { %1453 = vpow2.f32 %v664_v27 }
 0x19a   :  { %1455 = vpow2.f32 %v668_v28 }
 0x19b   :  { %1457 = vpow2.f32 %v674_v5 }
 0x19c   :  { %v611_v25 = vpop.permute.xlu2 %610 }
 0x19d   :  { %v591_v53 = vpop.permute.xlu0 %590  ;;  %v656_v12 = vsub.f32 %v1909_v8, %v611_v25 }
 0x19e   :  { %v652_v42 = vsub.f32 %v1794_v33, %v591_v53 }
 0x19f   :  { %v1454_v10 = vpop.eup %1453  ;;  %v680_v7 = vmul.f32 1.442695, %v656_v12 }
 0x1a0   :  { %v672_v13 = vmul.f32 1.442695, %v652_v42  ;;  %v696_v6 = vsel %vm1749_vm10, %v1454_v10, 0.0  ;;  %v1362_v37 = vpack.c.bf16 %v1452_v3, %v1454_v10  ;;  %v1456_v23 = vpop.eup %1455  ;;  %vm1367_vm10 = vmpackc.low %vm1848_vm7, %vm1773_vm1 }
 0x1a1   :  { %744 = vadd.xlane.f32.xlu0 %v696_v6  ;;  %v698_v33 = vsel %vm1743_vm8, %v1456_v23, 0.0  ;;  %v1458_v60 = vpop.eup %1457  ;;  %vm1370_vm8 = vmpackc.low %vm1813_vm12, %vm1819_vm13 }
 0x1a2   :  { %1459 = vpow2.f32 %v672_v13  ;;  %1363 = vmatmul.msk.bf16.vlgmr.msra.gmra.mxu0 %vm1361_vm4, %v1362_v37  ;;  %748 = vadd.xlane.f32.xlu1 %v698_v33  ;;  %v701_v38 = vsel %vm1848_vm7, %v1458_v60, 0.0  ;;  %vm2604_vm7 = vnez %v2569_v30 }
 0x1a3   :  { %746 = vadd.xlane.f32.xlu2 %v697_v61  ;;  %1461 = vpow2.f32 %v680_v7 }
 0x1a4   :  { %v586_v8 = vpop.permute.xlu1 %585  ;;  %v636_v5 = vpop.permute.xlu2 %635 }
 0x1a5   :  { %v651_v24 = vsub.f32 %v1838_v15, %v586_v8  ;;  %v606_v54 = vpop.permute.xlu0 %605  ;;  %v661_v22 = vsub.f32 %v1913_v18, %v636_v5 }
 0x1a6   :  { %v655_v34 = vsub.f32 %v1834_v11, %v606_v54 }
 0x1a7   :  { %v670_v35 = vmul.f32 1.442695, %v651_v24  ;;  %v690_v13 = vmul.f32 1.442695, %v661_v22  ;;  %v720_v22 = vld [vmem:[#allocation3 + $0x40] sm:$0xff] }
 0x1a8   :  { %v1460_v27 = vpop.eup %1459  ;;  %v678_v28 = vmul.f32 1.442695, %v655_v34 }
 0x1a9   :  { %1463 = vpow2.f32 %v670_v35  ;;  %v1368_v20 = vpack.c.bf16 %v1458_v60, %v1460_v27  ;;  %v700_v11 = vsel %vm1773_vm1, %v1460_v27, 0.0  ;;  %v1462_v53 = vpop.eup %1461  ;;  %vm1373_vm1 = vmpackc.low %vm1862_vm14, %vm1893_vm6 }
 0x1aa   :  { %1465 = vpow2.f32 %v678_v28  ;;  %754 = vadd.xlane.f32.xlu1 %v701_v38 }
 0x1ab   :  { %1369 = vmatmul.msk.bf16.vlgmr.msra.gmra.mxu1 %vm1367_vm10, %v1368_v20  ;;  %752 = vadd.xlane.f32.xlu2 %v700_v11 }
 0x1ac   :  { %v601_v15 = vpop.permute.xlu1 %600  ;;  %v641_v24 = vpop.permute.xlu2 %640 }
 0x1ad   :  { %v654_v25 = vsub.f32 %v1842_v16, %v601_v15  ;;  %v704_v16 = vsel %vm1893_vm6, %v1462_v53, 0.0  ;;  %v662_v58 = vsub.f32 %v1949_v4, %v641_v24  ;;  %vm1382_vm6 = vmpackc.low %vm1928_vm2, %vm1943_vm0 }
 0x1af   :  { %v1464_v3 = vpop.eup %1463  ;;  %v676_v42 = vmul.f32 1.442695, %v654_v25  ;;  %v692_v62 = vmul.f32 1.442695, %v662_v58 }
 0x1b0   :  { %v699_v10 = vsel %vm1807_vm9, %v1464_v3, 0.0  ;;  %v1365_v14 = vpack.c.bf16 %v1464_v3, %v1456_v23  ;;  %v1466_v12 = vpop.eup %1465  ;;  %vm2602_vm9 = vnez %v2579_v2  ;;  %v813_v2 = vld [vmem:[%s2534_s7 + $0x20] sm:$0xff] }
 0x1b1   :  { %750 = vadd.xlane.f32.xlu0 %v699_v10  ;;  %1467 = vpow2.f32 %v676_v42  ;;  %v703_v49 = vsel %vm1813_vm12, %v1466_v12, 0.0  ;;  %vm2603_vm12 = vnez %v2577_v0  ;;  %v2607_v0 = vld [vmem:[#allocation9_spill] sm:$0xff] }
 0x1b2   :  { %1366 = vmatmul.msk.bf16.gmra.mxu0 %vm1364_vm3, %v1365_v14  ;;  %760 = vadd.xlane.f32.xlu1 %v704_v16  ;;  %1469 = vpow2.f32 %v690_v13  ;;  %v2609_v16 = vsub.f32 %v2607_v0, %v2608_v29  ;;  %v2610_v13 = vsub.f32 %v2056_v55, %v2062_v44 }
 0x1b3   :  { %758 = vadd.xlane.f32.xlu2 %v703_v49 }
 0x1b4   :  { %v616_v6 = vpop.permute.xlu1 %615  ;;  %v562_v49 = vmul.f32 1.442695, %v2609_v16 }
 0x1b5   :  { %v657_v18 = vsub.f32 %v1883_v51, %v616_v6  ;;  %v631_v37 = vpop.permute.xlu0 %630  ;;  %v566_v6 = vmul.f32 1.442695, %v2610_v13 }
 0x1b6   :  { %v660_v46 = vsub.f32 %v1917_v19, %v631_v37 }
 0x1b7   :  { %v682_v23 = vmul.f32 1.442695, %v657_v18  ;;  %v1468_v33 = vpop.eup %1467  ;;  %v564_v18 = vmul.f32 1.442695, %v534_v9 }
 0x1b8   :  { %v688_v61 = vmul.f32 1.442695, %v660_v46  ;;  %v702_v7 = vsel %vm1819_vm13, %v1468_v33, 0.0  ;;  %v1371_v8 = vpack.c.bf16 %v1466_v12, %v1468_v33  ;;  %v1470_v34 = vpop.eup %1469  ;;  %vm1379_vm13 = vmpackc.low %vm2603_vm12, %vm2602_vm9  ;;  %v828_v46 = vpop.permute.xlu2 %827 }
 0x1b9   :  { %1471 = vpow2.f32 %v682_v23  ;;  %756 = vadd.xlane.f32.xlu0 %v702_v7 }
 0x1ba   :  { %1473 = vpow2.f32 %v688_v61 }
 0x1bb   :  { %1372 = vmatmul.msk.bf16.gmra.mxu1 %vm1370_vm8, %v1371_v8 }
 0x1bc   :  { %v621_v51 = vpop.permute.xlu1 %620 }
 0x1bd   :  { %v658_v19 = vsub.f32 %v1879_v50, %v621_v51  ;;  %v626_v54 = vpop.permute.xlu0 %625 }
 0x1be   :  { %v659_v60 = vsub.f32 %v1935_v39, %v626_v54 }
 0x1bf   :  { %v1472_v35 = vpop.eup %1471  ;;  %v684_v27 = vmul.f32 1.442695, %v658_v19 }
 0x1c0   :  { %v1474_v52 = vpop.eup %1473  ;;  %v686_v28 = vmul.f32 1.442695, %v659_v60  ;;  %v705_v20 = vsel %vm1862_vm14, %v1472_v35, 0.0  ;;  %v1374_v38 = vpack.c.bf16 %v1472_v35, %v1462_v53  ;;  %vm1376_vm14 = vmpackc.low %vm1923_vm15, %vm2604_vm7  ;;  %v2254_v55 = vpop.permute.xlu2 %842  ;;  %v714_v60 = vld [vmem:[#allocation3 + $0x10] sm:$0xff]  ;;  %v713_v35 = vld [vmem:[#allocation3 + $0x8] sm:$0xff] }
 0x1c1   :  { %1475 = vpow2.f32 %v684_v27  ;;  %v1380_v50 = vpack.c.bf16 %v1470_v34, %v1474_v52  ;;  %762 = vadd.xlane.f32.xlu0 %v705_v20  ;;  %v708_v25 = vsel %vm2602_vm9, %v1474_v52, 0.0  ;;  %v730_v58 = vmul.f32 %v2084_v1, %v714_v60 }
 0x1c2   :  { %1477 = vpow2.f32 %v686_v28  ;;  %1375 = vmatmul.msk.bf16.vlgmr.msra.gmra.mxu2 %vm1373_vm1, %v1374_v38  ;;  %v729_v20 = vmul.f32 %v2100_v47, %v713_v35  ;;  %v718_v35 = vld [vmem:[#allocation3 + $0x30] sm:$0xff] }
 0x1c3   :  { %1381 = vmatmul.msk.bf16.vlgmr.msra.gmra.mxu3 %vm1379_vm13, %v1380_v50  ;;  %1479 = vpow2.f32 %v692_v62 }
 0x1c4   :  { %v646_v39 = vpop.permute.xlu1 %645 }
 0x1c5   :  { %v663_v4 = vsub.f32 %v1939_v40, %v646_v39  ;;  %v709_v40 = vsel %vm2603_vm12, %v1470_v34, 0.0  ;;  %v2252_v44 = vpop.permute.xlu0 %837  ;;  %v712_v34 = vld [vmem:[#allocation3] sm:$0xff] }
 0x1c6   :  { %v728_v27 = vmul.f32 %v2098_v17, %v712_v34  ;;  %v809_v17 = vld [vmem:[%s2534_s7] sm:$0xff] }
 0x1c7   :  { %v1476_v11 = vpop.eup %1475  ;;  %v694_v15 = vmul.f32 1.442695, %v663_v4  ;;  %v717_v4 = vld [vmem:[#allocation3 + $0x28] sm:$0xff] }
 0x1c8   :  { %v1478_v31 = vpop.eup %1477  ;;  %v706_v5 = vsel %vm2604_vm7, %v1476_v11, 0.0  ;;  %v2256_v9 = vpop.permute.xlu2 %857  ;;  %v733_v1 = vmul.f32 %v2116_v56, %v717_v4  ;;  %v719_v56 = vld [vmem:[#allocation3 + $0x38] sm:$0xff] }
 0x1c9   :  { %1481 = vpow2.f32 %v694_v15  ;;  %764 = vadd.xlane.f32.xlu2 %v706_v5  ;;  %v707_v53 = vsel %vm1923_vm15, %v1478_v31, 0.0  ;;  %768 = vadd.xlane.f32.xlu0 %v708_v25  ;;  %v1480_v3 = vpop.eup %1479  ;;  %v1377_v30 = vpack.c.bf16 %v1478_v31, %v1476_v11  ;;  %v716_v11 = vld [vmem:[#allocation3 + $0x20] sm:$0xff]  ;;  %v905_v15 = vmul.f32 %v828_v46, %v809_v17 }
 0x1ca   :  { %766 = vadd.xlane.f32.xlu1 %v707_v53  ;;  %v710_v12 = vsel %vm1943_vm0, %v1480_v3, 0.0  ;;  %1483 = vpow2.f32 %v562_v49  ;;  %vm2611_vm0 = vmmov %vm2600_vm5  ;;  %v732_v31 = vmul.f32 %v2102_v45, %v716_v11  ;;  %v735_v16 = vmul.f32 %v2118_v43, %v719_v56  ;;  %v814_v43 = vld [vmem:[%s2534_s7 + $0x28] sm:$0xff] }
 0x1cb   :  { %1485 = vpow2.f32 %v566_v6  ;;  %vm2613_vm15 = vmmov %vm2611_vm0 }
 0x1cc   :  { %1487 = vpow2.f32 %v564_v18  ;;  %v833_v26 = vpop.permute.xlu1 %832  ;;  %vm2614_vm5 = vmmov %vm2611_vm0 }
 0x1cd   :  { %v848_v59 = vpop.permute.xlu0 %847  ;;  %vm2615_vm11 = vmmov %vm2611_vm0 }
 0x1ce   :  { %v909_v49 = vmul.f32 %v848_v59, %v813_v2  ;;  %vm2616_vm4 = vmmov %vm2611_vm0 }
 0x1cf   :  { %v1482_v42 = vpop.eup %1481  ;;  %vm2617_vm10 = vmmov %vm2611_vm0 }
 0x1d0   :  { %v711_v10 = vsel %vm1928_vm2, %v1482_v42, 0.0  ;;  %v1383_v14 = vpack.c.bf16 %v1482_v42, %v1480_v3  ;;  %v2243_v37 = vpop.eup %1483  ;;  %v2262_v8 = vpop.permute.xlu2 %872  ;;  %vm2612_vm2 = vmmov %vm2611_vm0 }
 0x1d1   :  { %770 = vadd.xlane.f32.xlu2 %v709_v40  ;;  %774 = vadd.xlane.f32.xlu0 %v711_v10  ;;  %v2246_v23 = vpop.eup %1485  ;;  %v715_v40 = vld [vmem:[#allocation3 + $0x18] sm:$0xff]  ;;  %v810_v10 = vld [vmem:[%s2534_s7 + $0x8] sm:$0xff]  ;;  %vm2618_vm3 = vmmov %vm2611_vm0 }
 0x1d2   :  { %772 = vadd.xlane.f32.xlu1 %v710_v12  ;;  %1378 = vmatmul.msk.bf16.gmra.mxu2 %vm1376_vm14, %v1377_v30  ;;  %v2249_v33 = vpop.eup %1487  ;;  %v731_v45 = vmul.f32 %v2114_v36, %v715_v40  ;;  %v736_v12 = vmul.f32 %v2130_v63, %v720_v22  ;;  %v906_v0 = vmul.f32 %v833_v26, %v810_v10  ;;  %v811_v63 = vld [vmem:[%s2534_s7 + $0x10] sm:$0xff]  ;;  %vm2619_vm8 = vmmov %vm2611_vm0 }
 0x1d3   :  { %1384 = vmatmul.msk.bf16.gmra.mxu3 %vm1382_vm6, %v1383_v14  ;;  %v734_v26 = vmul.f32 %v2128_v57, %v718_v35  ;;  %v812_v57 = vld [vmem:[%s2534_s7 + $0x18] sm:$0xff]  ;;  %vm2620_vm1 = vmmov %vm2611_vm0 }
 0x1d4   :  { %v2258_v61 = vpop.permute.xlu1 %852  ;;  %v908_v4 = vmul.f32 %v2254_v55, %v812_v57  ;;  %v816_v55 = vld [vmem:[%s2534_s7 + $0x38] sm:$0xff]  ;;  %vm2621_vm9 = vmmov %vm2611_vm0 }
 0x1d5   :  { %v2260_v7 = vpop.permute.xlu0 %862  ;;  %vm2622_vm12 = vmmov %vm2611_vm0 }
 0x1d6   :  { %v912_v2 = vmul.f32 %v2260_v7, %v816_v55  ;;  %vm2623_vm13 = vmmov %vm2611_vm0 }
 0x1d7   :  { %vm2624_vm7 = vmmov %vm2611_vm0 }
 0x1d8   :  { %v2268_v19 = vpop.permute.xlu2 %887  ;;  %vm2625_vm14 = vmmov %vm2611_vm0 }
 0x1d9   :  { %vm2626_vm6 = vmmov %vm2611_vm0 }
 0x1dc   :  { %v2264_v51 = vpop.permute.xlu1 %867 }
 0x1dd   :  { %v2266_v24 = vpop.permute.xlu0 %877 }
 0x1e4   :  { %v2270_v54 = vpop.permute.xlu1 %882 }
 0x1e5   :  { %892 = vperm.xlu0 %1421, %v2243_v37  }
 0x1e9   :  { %902 = vperm.xlu2 %1423, %v2246_v23  }
 0x1eb   :  { %897 = vperm.xlu1 %1422, %v2249_v33  }
 0x214   :  { %v745_v52 = vpop.xlane.xlu0 %744 }
 0x215   :  { %v776_v28 = vadd.f32 %v745_v52, %v728_v27  ;;  %v749_v38 = vpop.xlane.xlu1 %748  ;;  %v907_v27 = vmul.f32 %v2252_v44, %v811_v63  ;;  %v815_v44 = vld [vmem:[%s2534_s7 + $0x30] sm:$0xff] }
 0x216   :  { %v747_v50 = vpop.xlane.xlu2 %746  ;;  %v778_v62 = vadd.f32 %v749_v38, %v730_v58  ;;  %v910_v58 = vmul.f32 %v2258_v61, %v814_v43  ;;  %v911_v11 = vmul.f32 %v2256_v9, %v815_v44  ;;  %v823_v44 = vld [vmem:[%s2534_s7 + $0x70] sm:$0xff] }
 0x217   :  { %793 = vst.msk [vmem:[#allocation3] sm:$0xff] %vm2611_vm0, %v776_v28  ;;  %v777_v39 = vadd.f32 %v747_v50, %v729_v20 }
 0x218   :  { %795 = vst.msk [vmem:[#allocation3 + $0x10] sm:$0xff] %vm2612_vm2, %v778_v62  ;;  %v721_v62 = vld [vmem:[#allocation3 + $0x48] sm:$0xff] }
 0x219   :  { %794 = vst.msk [vmem:[#allocation3 + $0x8] sm:$0xff] %vm2613_vm15, %v777_v39  ;;  %v737_v61 = vmul.f32 %v2141_v48, %v721_v62 }
 0x21d   :  { %v755_v47 = vpop.xlane.xlu1 %754 }
 0x21e   :  { %v781_v5 = vadd.f32 %v755_v47, %v733_v1  ;;  %v753_v25 = vpop.xlane.xlu2 %752 }
 0x21f   :  { %v1002_v53 = vpop.f32.mrf.mxu0  ;;  %v780_v3 = vadd.f32 %v753_v25, %v732_v31  ;;  %v722_v31 = vld [vmem:[#allocation3 + $0x50] sm:$0xff]  ;;  %v723_v25 = vld [vmem:[#allocation3 + $0x58] sm:$0xff] }
 0x220   :  { %v1042_v42 = vadd.f32 %v1002_v53, %v905_v15  ;;  %798 = vst.msk [vmem:[#allocation3 + $0x28] sm:$0xff] %vm2614_vm5, %v781_v5  ;;  %v724_v53 = vld [vmem:[#allocation3 + $0x60] sm:$0xff]  ;;  %v738_v48 = vmul.f32 %v2133_v41, %v722_v31 }
 0x221   :  { %797 = vst.msk [vmem:[#allocation3 + $0x20] sm:$0xff] %vm2615_vm11, %v780_v3  ;;  %v739_v3 = vmul.f32 %v2143_v32, %v723_v25  ;;  %v727_v32 = vld [vmem:[#allocation3 + $0x78] sm:$0xff] }
 0x222   :  { %1058 = vst [vmem:[%s2534_s7] sm:$0xff] %v1042_v42  ;;  %v740_v42 = vmul.f32 %v2149_v21, %v724_v53  ;;  %v821_v21 = vld [vmem:[%s2534_s7 + $0x60] sm:$0xff] }
 0x224   :  { %v751_v14 = vpop.xlane.xlu0 %750 }
 0x225   :  { %v779_v30 = vadd.f32 %v751_v14, %v731_v45  ;;  %v761_v29 = vpop.xlane.xlu1 %760  ;;  %v725_v14 = vld [vmem:[#allocation3 + $0x68] sm:$0xff] }
 0x226   :  { %v784_v13 = vadd.f32 %v761_v29, %v736_v12  ;;  %v759_v6 = vpop.xlane.xlu2 %758  ;;  %v741_v7 = vmul.f32 %v2243_v37, %v725_v14 }
 0x227   :  { %796 = vst.msk [vmem:[#allocation3 + $0x18] sm:$0xff] %vm2616_vm4, %v779_v30  ;;  %v1004_v18 = vpop.f32.mrf.mxu0  ;;  %v783_v36 = vadd.f32 %v759_v6, %v735_v16  ;;  %v726_v30 = vld [vmem:[#allocation3 + $0x70] sm:$0xff] }
 0x228   :  { %v1043_v46 = vadd.f32 %v1004_v18, %v906_v0  ;;  %v1012_v34 = vpop.f32.mrf.mxu1  ;;  %801 = vst.msk [vmem:[#allocation3 + $0x40] sm:$0xff] %vm2617_vm10, %v784_v13  ;;  %v817_v0 = vld [vmem:[%s2534_s7 + $0x40] sm:$0xff]  ;;  %v742_v16 = vmul.f32 %v2249_v33, %v726_v30  ;;  %v917_v13 = vmul.f32 %v2268_v19, %v821_v21 }
 0x229   :  { %v1046_v60 = vadd.f32 %v1012_v34, %v909_v49  ;;  %800 = vst.msk [vmem:[#allocation3 + $0x38] sm:$0xff] %vm2618_vm3, %v783_v36  ;;  %v743_v49 = vmul.f32 %v2246_v23, %v727_v32  ;;  %v913_v6 = vmul.f32 %v2264_v51, %v817_v0  ;;  %v818_v23 = vld [vmem:[%s2534_s7 + $0x48] sm:$0xff] }
 0x22a   :  { %1059 = vst [vmem:[%s2534_s7 + $0x8] sm:$0xff] %v1043_v46  ;;  %v914_v33 = vmul.f32 %v2262_v8, %v818_v23 }
 0x22b   :  { %1062 = vst [vmem:[%s2534_s7 + $0x20] sm:$0xff] %v1046_v60 }
 0x22c   :  { %v757_v59 = vpop.xlane.xlu0 %756 }
 0x22d   :  { %v782_v52 = vadd.f32 %v757_v59, %v734_v26  ;;  %v819_v59 = vld [vmem:[%s2534_s7 + $0x50] sm:$0xff] }
 0x22f   :  { %v1007_v28 = vpop.f32.mrf.mxu0  ;;  %799 = vst.msk [vmem:[#allocation3 + $0x30] sm:$0xff] %vm2619_vm8, %v782_v52 }
 0x230   :  { %v1044_v20 = vadd.f32 %v1007_v28, %v907_v27  ;;  %v1014_v38 = vpop.f32.mrf.mxu1  ;;  %v915_v27 = vmul.f32 %v2266_v24, %v819_v59  ;;  %v822_v28 = vld [vmem:[%s2534_s7 + $0x68] sm:$0xff]  ;;  %v824_v24 = vld [vmem:[%s2534_s7 + $0x78] sm:$0xff] }
 0x231   :  { %v1047_v50 = vadd.f32 %v1014_v38, %v910_v58 }
 0x232   :  { %1060 = vst [vmem:[%s2534_s7 + $0x10] sm:$0xff] %v1044_v20 }
 0x233   :  { %1063 = vst [vmem:[%s2534_s7 + $0x28] sm:$0xff] %v1047_v50  ;;  %v820_v50 = vld [vmem:[%s2534_s7 + $0x58] sm:$0xff] }
 0x234   :  { %v763_v39 = vpop.xlane.xlu0 %762 }
 0x235   :  { %v785_v17 = vadd.f32 %v763_v39, %v737_v61  ;;  %v916_v61 = vmul.f32 %v2270_v54, %v820_v50 }
 0x237   :  { %v1009_v1 = vpop.f32.mrf.mxu0  ;;  %802 = vst.msk [vmem:[#allocation3 + $0x48] sm:$0xff] %vm2620_vm1, %v785_v17 }
 0x238   :  { %v1045_v15 = vadd.f32 %v1009_v1, %v908_v4  ;;  %v1017_v47 = vpop.f32.mrf.mxu1 }
 0x239   :  { %v1048_v5 = vadd.f32 %v1017_v47, %v911_v11 }
 0x23a   :  { %1061 = vst [vmem:[%s2534_s7 + $0x18] sm:$0xff] %v1045_v15 }
 0x23b   :  { %1064 = vst [vmem:[%s2534_s7 + $0x30] sm:$0xff] %v1048_v5 }
 0x23c   :  { %v765_v9 = vpop.xlane.xlu2 %764  ;;  %v769_v10 = vpop.xlane.xlu0 %768 }
 0x23d   :  { %v786_v40 = vadd.f32 %v765_v9, %v738_v48  ;;  %v767_v22 = vpop.xlane.xlu1 %766  ;;  %v788_v56 = vadd.f32 %v769_v10, %v740_v42 }
 0x23e   :  { %v787_v45 = vadd.f32 %v767_v22, %v739_v3 }
 0x23f   :  { %803 = vst.msk [vmem:[#allocation3 + $0x50] sm:$0xff] %vm2621_vm9, %v786_v40 }
 0x240   :  { %804 = vst.msk [vmem:[#allocation3 + $0x58] sm:$0xff] %vm2622_vm12, %v787_v45  ;;  %v1019_v41 = vpop.f32.mrf.mxu1 }
 0x241   :  { %805 = vst.msk [vmem:[#allocation3 + $0x60] sm:$0xff] %vm2623_vm13, %v788_v56  ;;  %v1049_v12 = vadd.f32 %v1019_v41, %v912_v2 }
 0x243   :  { %1065 = vst [vmem:[%s2534_s7 + $0x38] sm:$0xff] %v1049_v12 }
 0x244   :  { %v771_v29 = vpop.xlane.xlu2 %770  ;;  %v775_v46 = vpop.xlane.xlu0 %774 }
 0x245   :  { %v789_v18 = vadd.f32 %v771_v29, %v741_v7  ;;  %v773_v36 = vpop.xlane.xlu1 %772  ;;  %v791_v60 = vadd.f32 %v775_v46, %v743_v49  ;;  %v1022_v35 = vpop.f32.mrf.mxu2 }
 0x246   :  { %v790_v34 = vadd.f32 %v773_v36, %v742_v16  ;;  %v1032_v63 = vpop.f32.mrf.mxu3  ;;  %v1050_v43 = vadd.f32 %v1022_v35, %v913_v6 }
 0x247   :  { %806 = vst.msk [vmem:[#allocation3 + $0x68] sm:$0xff] %vm2624_vm7, %v789_v18  ;;  %v1054_v37 = vadd.f32 %v1032_v63, %v917_v13 }
 0x248   :  { %807 = vst.msk [vmem:[#allocation3 + $0x70] sm:$0xff] %vm2625_vm14, %v790_v34 }
 0x249   :  { %808 = vst.msk [vmem:[#allocation3 + $0x78] sm:$0xff] %vm2626_vm6, %v791_v60 }
 0x24a   :  { %1066 = vst [vmem:[%s2534_s7 + $0x40] sm:$0xff] %v1050_v43 }
 0x24b   :  { %1070 = vst [vmem:[%s2534_s7 + $0x60] sm:$0xff] %v1054_v37 }
 0x24c   :  { %v903_v62 = vpop.permute.xlu2 %902 }
 0x24d   :  { %v1024_v51 = vpop.f32.mrf.mxu2  ;;  %v920_v39 = vmul.f32 %v903_v62, %v824_v24 }
 0x24e   :  { %v1034_v19 = vpop.f32.mrf.mxu3  ;;  %v1051_v26 = vadd.f32 %v1024_v51, %v914_v33 }
 0x250   :  { %1067 = vst [vmem:[%s2534_s7 + $0x48] sm:$0xff] %v1051_v26 }
 0x255   :  { %v1027_v52 = vpop.f32.mrf.mxu2 }
 0x256   :  { %v1037_v58 = vpop.f32.mrf.mxu3  ;;  %v1052_v8 = vadd.f32 %v1027_v52, %v915_v27 }
 0x257   :  { %v893_v20 = vpop.permute.xlu0 %892 }
 0x258   :  { %1068 = vst [vmem:[%s2534_s7 + $0x50] sm:$0xff] %v1052_v8  ;;  %v918_v38 = vmul.f32 %v893_v20, %v822_v28 }
 0x25a   :  { %v1055_v57 = vadd.f32 %v1034_v19, %v918_v38 }
 0x25c   :  { %1071 = vst [vmem:[%s2534_s7 + $0x68] sm:$0xff] %v1055_v57 }
 0x25d   :  { %v898_v4 = vpop.permute.xlu1 %897  ;;  %v1029_v11 = vpop.f32.mrf.mxu2 }
 0x25e   :  { %v919_v17 = vmul.f32 %v898_v4, %v823_v44  ;;  %v1039_v1 = vpop.f32.mrf.mxu3  ;;  %v1053_v15 = vadd.f32 %v1029_v11, %v916_v61 }
 0x25f   :  { %v1057_v47 = vadd.f32 %v1039_v1, %v920_v39 }
 0x260   :  { %v1056_v31 = vadd.f32 %v1037_v58, %v919_v17  ;;  %1069 = vst [vmem:[%s2534_s7 + $0x58] sm:$0xff] %v1053_v15 }
 0x261   :  { %1073 = vst [vmem:[%s2534_s7 + $0x78] sm:$0xff] %v1057_v47 }
 0x262   :  { %1072 = vst [vmem:[%s2534_s7 + $0x70] sm:$0xff] %v1056_v31 }
 0x263 PF:  { %v1097_v54 = vld [vmem:[#allocation3 + $0x20] sm:$0xff]  ;;  %v1095_v5 = vld [vmem:[#allocation3 + $0x10] sm:$0xff]  ;;  %v1528_v53 = vmov 0   ;;  %v1098_v3 = vld [vmem:[#allocation3 + $0x28] sm:$0xff] }
 0x264   :  { %v1093_v25 = vld [vmem:[#allocation3] sm:$0xff]  ;;  %1491 = vset.pattern.permute.xlu2 %v1528_v53  ;;  %1490 = vset.pattern.permute.xlu1 %v1528_v53  ;;  %v1113_v48 = vmax.f32 %v1097_v54, 1e-30  ;;  %v1111_v55 = vmax.f32 %v1095_v5, 1e-30  ;;  %v1096_v42 = vld [vmem:[#allocation3 + $0x18] sm:$0xff] }
 0x265   :  { %v1109_v9 = vmax.f32 %v1093_v25, 1e-30  ;;  %1489 = vset.pattern.permute.xlu0 %v1528_v53  ;;  %v1094_v40 = vld [vmem:[#allocation3 + $0x8] sm:$0xff]  ;;  %v1114_v22 = vmax.f32 %v1098_v3, 1e-30  ;;  %v1101_v41 = vld [vmem:[#allocation3 + $0x40] sm:$0xff] }
 0x266   :  { %1493 = vrcp.f32 %v1113_v48  ;;  %v1112_v10 = vmax.f32 %v1096_v42, 1e-30  ;;  %v1110_v45 = vmax.f32 %v1094_v40, 1e-30  ;;  %v1100_v12 = vld [vmem:[#allocation3 + $0x38] sm:$0xff]  ;;  %v1099_v30 = vld [vmem:[#allocation3 + $0x30] sm:$0xff] }
 0x267   :  { %1495 = vrcp.f32 %v1111_v55  ;;  %v1117_v32 = vmax.f32 %v1101_v41, 1e-30  ;;  %v1116_v21 = vmax.f32 %v1100_v12, 1e-30  ;;  %v1115_v7 = vmax.f32 %v1099_v30, 1e-30 }
 0x268   :  { %1497 = vrcp.f32 %v1109_v9  ;;  %v1104_v49 = vld [vmem:[#allocation3 + $0x58] sm:$0xff]  ;;  %v1103_v13 = vld [vmem:[#allocation3 + $0x50] sm:$0xff]  ;;  %v1102_v6 = vld [vmem:[#allocation3 + $0x48] sm:$0xff] }
 0x269   :  { %1499 = vrcp.f32 %v1114_v22  ;;  %v1120_v18 = vmax.f32 %v1104_v49, 1e-30  ;;  %v1119_v36 = vmax.f32 %v1103_v13, 1e-30  ;;  %v1118_v34 = vmax.f32 %v1102_v6, 1e-30 }
 0x26a   :  { %1501 = vrcp.f32 %v1112_v10  ;;  %v1107_v63 = vld [vmem:[#allocation3 + $0x70] sm:$0xff]  ;;  %v1106_v43 = vld [vmem:[#allocation3 + $0x68] sm:$0xff]  ;;  %v1105_v37 = vld [vmem:[#allocation3 + $0x60] sm:$0xff] }
 0x26b   :  { %1503 = vrcp.f32 %v1110_v45  ;;  %v1123_v23 = vmax.f32 %v1107_v63, 1e-30  ;;  %v1122_v33 = vmax.f32 %v1106_v43, 1e-30  ;;  %v1121_v19 = vmax.f32 %v1105_v37, 1e-30 }
 0x26c   :  { %v1494_v56 = vpop.eup %1493  ;;  %1505 = vrcp.f32 %v1117_v32  ;;  %v1108_v27 = vld [vmem:[#allocation3 + $0x78] sm:$0xff]  ;;  %v1145_v38 = vld [vmem:[%s2534_s7 + $0x20] sm:$0xff]  ;;  %v1146_v61 = vld [vmem:[%s2534_s7 + $0x28] sm:$0xff] }
 0x26d   :  { %v1496_v2 = vpop.eup %1495  ;;  %1179 = vperm.xlu2 %1491, %v1494_v56   ;;  %1507 = vrcp.f32 %v1116_v21  ;;  %v1124_v58 = vmax.f32 %v1108_v27, 1e-30  ;;  %v2416_v24 = vld [vmem:[%s2530_s6] ss:$0 sm:$0xff]  ;;  %v1152_v5 = vld [vmem:[%s2534_s7 + $0x58] sm:$0xff]  ;;  %v1143_v25 = vld [vmem:[%s2534_s7 + $0x10] sm:$0xff] }
 0x26e   :  { %v1498_v14 = vpop.eup %1497  ;;  %1169 = vperm.xlu1 %1490, %v1496_v2   ;;  %1509 = vrcp.f32 %v1115_v7  ;;  %v1149_v1 = vld [vmem:[%s2534_s7 + $0x40] sm:$0xff]  ;;  %v1155_v41 = vld [vmem:[%s2534_s7 + $0x70] sm:$0xff]  ;;  %v1144_v12 = vld [vmem:[%s2534_s7 + $0x18] sm:$0xff] }
 0x26f   :  { %1159 = vperm.xlu0 %1489, %v1498_v14   ;;  %v1500_v0 = vpop.eup %1499  ;;  %1511 = vrcp.f32 %v1120_v18  ;;  %v1141_v48 = vld [vmem:[%s2534_s7] sm:$0xff]  ;;  %v1142_v32 = vld [vmem:[%s2534_s7 + $0x8] sm:$0xff] }
 0x270   :  { %v1502_v29 = vpop.eup %1501  ;;  %1513 = vrcp.f32 %v1119_v36 }
 0x271   :  { %v1504_v16 = vpop.eup %1503  ;;  %1515 = vrcp.f32 %v1118_v34  ;;  %v1148_v34 = vld [vmem:[%s2534_s7 + $0x38] sm:$0xff] }
 0x272   :  { %v1506_v46 = vpop.eup %1505  ;;  %1517 = vrcp.f32 %v1123_v23 }
 0x273   :  { %v1508_v60 = vpop.eup %1507  ;;  %1519 = vrcp.f32 %v1122_v33 }
 0x274   :  { %v1510_v35 = vpop.eup %1509  ;;  %1521 = vrcp.f32 %v1121_v19 }
 0x275   :  { %1184 = vperm.xlu2 %1491, %v1500_v0   ;;  %v1512_v51 = vpop.eup %1511  ;;  %1523 = vrcp.f32 %v1124_v58 }
 0x276   :  { %1174 = vperm.xlu1 %1490, %v1502_v29   ;;  %v1514_v26 = vpop.eup %1513 }
 0x277   :  { %1164 = vperm.xlu0 %1489, %v1504_v16   ;;  %v1516_v59 = vpop.eup %1515 }
 0x278   :  { %v1518_v52 = vpop.eup %1517 }
 0x279   :  { %v1520_v28 = vpop.eup %1519 }
 0x27a   :  { %v1522_v8 = vpop.eup %1521 }
 0x27b   :  { %v1524_v20 = vpop.eup %1523 }
 0x27d   :  { %1199 = vperm.xlu2 %1491, %v1506_v46  }
 0x27e   :  { %1194 = vperm.xlu1 %1490, %v1508_v60   ;;  %v1147_v60 = vld [vmem:[%s2534_s7 + $0x30] sm:$0xff] }
 0x27f   :  { %1189 = vperm.xlu0 %1489, %v1510_v35  }
 0x285   :  { %1214 = vperm.xlu2 %1491, %v1512_v51  }
 0x286   :  { %1209 = vperm.xlu1 %1490, %v1514_v26   ;;  %v1151_v26 = vld [vmem:[%s2534_s7 + $0x50] sm:$0xff] }
 0x287   :  { %1204 = vperm.xlu0 %1489, %v1516_v59   ;;  %v1150_v59 = vld [vmem:[%s2534_s7 + $0x48] sm:$0xff] }
 0x28d   :  { %1229 = vperm.xlu2 %1491, %v1518_v52  }
 0x28e   :  { %1224 = vperm.xlu1 %1490, %v1520_v28  }
 0x28f   :  { %1219 = vperm.xlu0 %1489, %v1522_v8  }
 0x297   :  { %1234 = vperm.xlu0 %1489, %v1524_v20  }
 0x2c7   :  { %v1180_v50 = vpop.permute.xlu2 %1179 }
 0x2c8   :  { %v1241_v62 = vmul.f32 %v1180_v50, %v1145_v38 }
 0x2ca   :  { %v1261_v57 = vadd.f32 %v2416_v24, %v1241_v62  ;;  %v1154_v62 = vld [vmem:[%s2534_s7 + $0x68] sm:$0xff] }
 0x2cc   :  { %v1277_v44 = vmax.f32 %v1261_v57, 0.0  ;;  %v1153_v57 = vld [vmem:[%s2534_s7 + $0x60] sm:$0xff] }
 0x2ce   :  { %1293 = vst [vmem:[%s2534_s7 + $0x20] sm:$0xff] %v1277_v44 }
 0x2cf   :  { %v1185_v39 = vpop.permute.xlu2 %1184 }
 0x2d0   :  { %v1242_v4 = vmul.f32 %v1185_v39, %v1146_v61 }
 0x2d2   :  { %v1262_v17 = vadd.f32 %v2416_v24, %v1242_v4 }
 0x2d4   :  { %v1278_v11 = vmax.f32 %v1262_v17, 0.0 }
 0x2d6   :  { %1294 = vst [vmem:[%s2534_s7 + $0x28] sm:$0xff] %v1278_v11 }
 0x2d7   :  { %v1200_v15 = vpop.permute.xlu2 %1199 }
 0x2d8   :  { %v1245_v47 = vmul.f32 %v1200_v15, %v1149_v1 }
 0x2da   :  { %v1265_v31 = vadd.f32 %v2416_v24, %v1245_v47  ;;  %v1156_v47 = vld [vmem:[%s2534_s7 + $0x78] sm:$0xff] }
 0x2dc   :  { %v1281_v54 = vmax.f32 %v1265_v31, 0.0 }
 0x2de   :  { %1297 = vst [vmem:[%s2534_s7 + $0x40] sm:$0xff] %v1281_v54 }
 0x2df   :  { %v1215_v53 = vpop.permute.xlu2 %1214 }
 0x2e0   :  { %v1248_v55 = vmul.f32 %v1215_v53, %v1152_v5  ;;  %v1170_v9 = vpop.permute.xlu1 %1169 }
 0x2e1   :  { %v1239_v3 = vmul.f32 %v1170_v9, %v1143_v25  ;;  %v1160_v42 = vpop.permute.xlu0 %1159 }
 0x2e2   :  { %v1268_v40 = vadd.f32 %v2416_v24, %v1248_v55  ;;  %v1237_v22 = vmul.f32 %v1160_v42, %v1141_v48 }
 0x2e3   :  { %v1259_v10 = vadd.f32 %v2416_v24, %v1239_v3 }
 0x2e4   :  { %v1284_v45 = vmax.f32 %v1268_v40, 0.0  ;;  %v1257_v56 = vadd.f32 %v2416_v24, %v1237_v22 }
 0x2e5   :  { %v1275_v2 = vmax.f32 %v1259_v10, 0.0 }
 0x2e6   :  { %1300 = vst [vmem:[%s2534_s7 + $0x58] sm:$0xff] %v1284_v45  ;;  %v1273_v14 = vmax.f32 %v1257_v56, 0.0 }
 0x2e7   :  { %1291 = vst [vmem:[%s2534_s7 + $0x10] sm:$0xff] %v1275_v2  ;;  %v1230_v30 = vpop.permute.xlu2 %1229 }
 0x2e8   :  { %1289 = vst [vmem:[%s2534_s7] sm:$0xff] %v1273_v14  ;;  %v1251_v21 = vmul.f32 %v1230_v30, %v1155_v41  ;;  %v1175_v0 = vpop.permute.xlu1 %1174 }
 0x2e9   :  { %v1240_v7 = vmul.f32 %v1175_v0, %v1144_v12  ;;  %v1165_v29 = vpop.permute.xlu0 %1164 }
 0x2ea   :  { %v1271_v16 = vadd.f32 %v2416_v24, %v1251_v21  ;;  %v1238_v49 = vmul.f32 %v1165_v29, %v1142_v32 }
 0x2eb   :  { %v1260_v13 = vadd.f32 %v2416_v24, %v1240_v7 }
 0x2ec   :  { %v1287_v6 = vmax.f32 %v1271_v16, 0.0  ;;  %v1258_v18 = vadd.f32 %v2416_v24, %v1238_v49 }
 0x2ed   :  { %v1276_v36 = vmax.f32 %v1260_v13, 0.0 }
 0x2ee   :  { %1303 = vst [vmem:[%s2534_s7 + $0x70] sm:$0xff] %v1287_v6  ;;  %v1274_v46 = vmax.f32 %v1258_v18, 0.0 }
 0x2ef   :  { %1292 = vst [vmem:[%s2534_s7 + $0x18] sm:$0xff] %v1276_v36 }
 0x2f0   :  { %1290 = vst [vmem:[%s2534_s7 + $0x8] sm:$0xff] %v1274_v46  ;;  %v1195_v35 = vpop.permute.xlu1 %1194 }
 0x2f1   :  { %v1244_v63 = vmul.f32 %v1195_v35, %v1148_v34  ;;  %v1190_v43 = vpop.permute.xlu0 %1189 }
 0x2f2   :  { %v1243_v37 = vmul.f32 %v1190_v43, %v1147_v60 }
 0x2f3   :  { %v1264_v23 = vadd.f32 %v2416_v24, %v1244_v63 }
 0x2f4   :  { %v1263_v33 = vadd.f32 %v2416_v24, %v1243_v37 }
 0x2f5   :  { %v1280_v51 = vmax.f32 %v1264_v23, 0.0 }
 0x2f6   :  { %v1279_v19 = vmax.f32 %v1263_v33, 0.0 }
 0x2f7   :  { %1296 = vst [vmem:[%s2534_s7 + $0x38] sm:$0xff] %v1280_v51 }
 0x2f8   :  { %1295 = vst [vmem:[%s2534_s7 + $0x30] sm:$0xff] %v1279_v19  ;;  %v1210_v27 = vpop.permute.xlu1 %1209 }
 0x2f9   :  { %v1247_v52 = vmul.f32 %v1210_v27, %v1151_v26  ;;  %v1205_v58 = vpop.permute.xlu0 %1204 }
 0x2fa   :  { %v1246_v28 = vmul.f32 %v1205_v58, %v1150_v59 }
 0x2fb   :  { %v1267_v8 = vadd.f32 %v2416_v24, %v1247_v52 }
 0x2fc   :  { %v1266_v20 = vadd.f32 %v2416_v24, %v1246_v28 }
 0x2fd   :  { %v1283_v38 = vmax.f32 %v1267_v8, 0.0 }
 0x2fe   :  { %v1282_v50 = vmax.f32 %v1266_v20, 0.0 }
 0x2ff   :  { %1299 = vst [vmem:[%s2534_s7 + $0x50] sm:$0xff] %v1283_v38 }
 0x300   :  { %1298 = vst [vmem:[%s2534_s7 + $0x48] sm:$0xff] %v1282_v50  ;;  %v1225_v44 = vpop.permute.xlu1 %1224 }
 0x301   :  { %v1250_v61 = vmul.f32 %v1225_v44, %v1154_v62  ;;  %v1220_v39 = vpop.permute.xlu0 %1219 }
 0x302   :  { %v1249_v4 = vmul.f32 %v1220_v39, %v1153_v57 }
 0x303   :  { %v1270_v17 = vadd.f32 %v2416_v24, %v1250_v61 }
 0x304   :  { %v1269_v11 = vadd.f32 %v2416_v24, %v1249_v4 }
 0x305   :  { %v1286_v1 = vmax.f32 %v1270_v17, 0.0 }
 0x306   :  { %v1285_v15 = vmax.f32 %v1269_v11, 0.0 }
 0x307   :  { %1302 = vst [vmem:[%s2534_s7 + $0x68] sm:$0xff] %v1286_v1 }
 0x308   :  { %1301 = vst [vmem:[%s2534_s7 + $0x60] sm:$0xff] %v1285_v15 }
 0x309   :  { %v1235_v31 = vpop.permute.xlu0 %1234 }
 0x30a   :  { %v1252_v54 = vmul.f32 %v1235_v31, %v1156_v47 }
 0x30c   :  { %v1272_v5 = vadd.f32 %v2416_v24, %v1252_v54 }
 0x30e   :  { %v1288_v25 = vmax.f32 %v1272_v5, 0.0 }
 0x310   :  { %1304 = vst [vmem:[%s2534_s7 + $0x78] sm:$0xff] %v1288_v25 }

</bundles_post_ra>
